<compile_context>
chip_gen: v6e
topology: v6e:2x2x1
jax: 0.10.0
libtpu: 0.0.40
codegen_flags: <defaults>
</compile_context>

<pallas_src>
import jax
import jax.numpy as jnp
from jax.experimental import pallas as pl
from jax.experimental.pallas import tpu as pltpu


def _scatter_sum_kernel(seg_ref, feat_ref, out_ref):
    """Scatter-add one point tile of (features ++ ones ++ zero-pad) into (8, M) bins."""
    i = pl.program_id(1)                      # point-tile index (reduction axis)

    # NOTE: init gating must follow the reduction axis; if the grid is ever
    # reordered (e.g. an m-block grid axis is added), move this gate with it.
    @pl.when(i == 0)
    def _():
        out_ref[...] = jnp.zeros_like(out_ref)

    seg = seg_ref[...]                        # (1, TILE_N) int32; -1 => padded/invalid
    feat = feat_ref[...]                      # (C8, TILE_N) f32; row C is all-ones
    m = out_ref.shape[-1]
    tile_n = seg.shape[-1]
    m_block = 128 if m % 128 == 0 else m      # block M so each dot's one-hot / output
    num_mb = m // m_block                     # tile is (m_block, TILE_N) / (8, 128)

    # Voxel-id iota built once and shifted per m-block (compare + bool->f32
    # convert is the dominant VALU work of this scheme).
    base_ids = jax.lax.broadcasted_iota(jnp.int32, (m_block, tile_n), 0)

    # Static Python loop: num_mb is tiny (2 at m_max=256) and static slices on
    # the resident (8, m_max) accumulator are free, unmasked full-tile stores.
    for mb in range(num_mb):
        lo = mb * m_block
        # one-hot[v, p] = (seg[p] == lo + v); invalid points (seg = -1) match nothing.
        onehot = (seg == (base_ids + lo)).astype(jnp.float32)   # (m_block, TILE_N)
        # (C8, m_block) += feat . one-hot^T : contract over the point (lane) axis
        # of both operands (q*k^T form -> no XLU transpose of the one-hot).
        out_ref[:, lo:lo + m_block] += jax.lax.dot_general(
            feat, onehot, (((1,), (1,)), ((), ())),
            preferred_element_type=jnp.float32)


def scatter_sum_pallas(seg, feat_aug, m_max, tile_n=2048, num_chunks=1):
    """seg: (1, N_pad) int32 (-1 = ignore); feat_aug: (C8, N_pad) f32, row C = 1.

    Returns partial sums of shape (num_chunks, C8, m_max); caller sums over the
    chunk axis and divides rows [:C] by row C (the per-voxel point count).
    """
    c8, n_pad = feat_aug.shape
    assert c8 % 8 == 0 and m_max % 128 == 0
    assert n_pad % (tile_n * num_chunks) == 0
    tiles_per_chunk = n_pad // (tile_n * num_chunks)

    partial = pl.pallas_call(
        _scatter_sum_kernel,
        out_shape=jax.ShapeDtypeStruct((num_chunks, c8, m_max), jnp.float32),
        grid_spec=pltpu.PrefetchScalarGridSpec(
            num_scalar_prefetch=0,
            grid=(num_chunks, tiles_per_chunk),
            in_specs=[
                pl.BlockSpec((1, tile_n),
                             lambda g, i: (0, g * tiles_per_chunk + i)),
                pl.BlockSpec((c8, tile_n),
                             lambda g, i: (0, g * tiles_per_chunk + i)),
            ],
            out_specs=pl.BlockSpec((None, c8, m_max), lambda g, i: (g, 0, 0)),
        ),
        compiler_params=pltpu.CompilerParams(
            # Leading chunk axis is independent -> "parallel" (sharded across
            # TensorCores on multi-TC chips); point-tile axis is the reduction.
            dimension_semantics=("parallel", "arbitrary")),
    )(seg, feat_aug)
    return partial


def _default_num_chunks():
    """2 on multi-TensorCore chips (v7x, v4/v5p megacore), else 1 (v5e/v6e)."""
    try:
        kind = jax.devices()[0].device_kind.lower()
    except Exception:
        return 1
    return 2 if any(t in kind for t in ("v7", "v4", "v5p")) else 1


class DynamicSimpleVFE:
    """JAX/Pallas port of DynamicSimpleVFE (mean DynamicScatter). No learned params."""

    def __init__(self, voxel_size=(0.2, 0.2, 4),
                 point_cloud_range=(0, -40, -3, 70.4, 40, 1),
                 max_voxels=256, tile_n=2048, num_chunks=None):
        vx, vy, vz = voxel_size
        x0, y0, z0, x1, y1, z1 = point_cloud_range
        self.gx = int(round((x1 - x0) / vx))   # 352
        self.gy = int(round((y1 - y0) / vy))   # 400
        self.gz = int(round((z1 - z0) / vz))   # 1
        assert max_voxels % 128 == 0, "keep M_MAX a multiple of 128 for lane density"
        assert tile_n % 256 == 0, "keep tile_n a multiple of 256"
        self.m_max = max_voxels
        self.tile_n = tile_n
        self.num_chunks = _default_num_chunks() if num_chunks is None else num_chunks

    def __call__(self, features, coors):
        n, c = features.shape
        gx, gy, gz = self.gx, self.gy, self.gz
        m_max, tile_n, num_chunks = self.m_max, self.tile_n, self.num_chunks

        valid = jnp.all(coors >= 0, axis=1)
        b, z, y, x = coors[:, 0], coors[:, 1], coors[:, 2], coors[:, 3]
        lin = ((b * gz + z) * gy + y) * gx + x
        sentinel = jnp.iinfo(jnp.int32).max
        lin = jnp.where(valid, lin, sentinel).astype(jnp.int32)

        # glue: unique voxel ids (sorted, like torch.unique) + per-point segment id
        # TODO(synk): jnp.unique silently truncates if occupied voxels exceed
        # max_voxels (static cap needed by JAX); DynamicScatter has no such cap.
        uniq, inv = jnp.unique(lin, size=m_max, fill_value=sentinel,
                               return_inverse=True)
        seg = jnp.where(valid, inv.astype(jnp.int32), -1)

        # lane-dense padded inputs: seg (1, N_pad); feat_aug (C8, N_pad) where
        # rows [:C] are features^T, row C is all-ones (count row), rows C+1..7
        # are zero-padding so the resident accumulator is whole (8, 128) tiles.
        c1 = c + 1
        c8 = ((c1 + 7) // 8) * 8
        chunk = tile_n * num_chunks
        n_pad = ((n + chunk - 1) // chunk) * chunk
        seg_p = jnp.full((1, n_pad), -1, jnp.int32).at[0, :n].set(seg)
        feat_aug = jnp.zeros((c8, n_pad), jnp.float32)
        feat_aug = feat_aug.at[:c, :n].set(features.astype(jnp.float32).T)
        feat_aug = feat_aug.at[c, :].set(1.0)   # count row (padded pts have seg=-1)

        partial = scatter_sum_pallas(seg_p, feat_aug, m_max, tile_n, num_chunks)
        total = partial.sum(axis=0)              # (C8, m_max)
        cnt = total[c]                           # per-voxel point count
        voxel_mean = (total[:c] / jnp.maximum(cnt, 1.0)[None, :]).T   # (m_max, C)

        # glue: decode linear voxel ids back to (batch, z, y, x)
        voxel_valid = uniq != sentinel
        rem = jnp.where(voxel_valid, uniq, 0)
        bb = rem // (gz * gy * gx); rem = rem % (gz * gy * gx)
        zz = rem // (gy * gx);      rem = rem % (gy * gx)
        yy = rem // gx;             xx = rem % gx
        voxel_coors = jnp.stack([bb, zz, yy, xx], axis=1).astype(jnp.int32)
        voxel_coors = jnp.where(voxel_valid[:, None], voxel_coors, -1)
        num_voxels = jnp.sum(voxel_valid.astype(jnp.int32))

        return voxel_mean, voxel_coors, num_voxels


if __name__ == "__main__":
    key = jax.random.PRNGKey(0)
    N, C = 200, 4
    M_MAX = 256
    k1, k2, k3, k4 = jax.random.split(key, 4)

    features = jax.random.normal(k1, (N, C), jnp.float32)
    bcol = jax.random.randint(k2, (N, 1), 0, 2, dtype=jnp.int32)
    zcol = jnp.zeros((N, 1), jnp.int32)
    ycol = jax.random.randint(k3, (N, 1), 0, 20, dtype=jnp.int32)
    xcol = jax.random.randint(k4, (N, 1), 0, 20, dtype=jnp.int32)
    coors = jnp.concatenate([bcol, zcol, ycol, xcol], axis=1)
    coors = coors.at[:5].set(-1)   # a few invalid points (dropped, as in DynamicScatter)

    vfe = DynamicSimpleVFE(max_voxels=M_MAX)
    voxel_feats, voxel_coors, num_voxels = vfe(features, coors)
    jax.block_until_ready((voxel_feats, voxel_coors, num_voxels))

    # pure-JAX reference (segment mean) to validate the Pallas scatter-mean
    valid = jnp.all(coors >= 0, axis=1)
    gx, gy, gz = vfe.gx, vfe.gy, vfe.gz
    lin = ((coors[:, 0] * gz + coors[:, 1]) * gy + coors[:, 2]) * gx + coors[:, 3]
    sentinel = jnp.iinfo(jnp.int32).max
    lin = jnp.where(valid, lin, sentinel).astype(jnp.int32)
    _, inv = jnp.unique(lin, size=M_MAX, fill_value=sentinel, return_inverse=True)
    seg_ref = jnp.where(valid, inv.astype(jnp.int32), M_MAX)
    sums = jax.ops.segment_sum(features * valid[:, None].astype(jnp.float32),
                               seg_ref, num_segments=M_MAX + 1)[:M_MAX]
    cnts = jax.ops.segment_sum(valid.astype(jnp.float32),
                               seg_ref, num_segments=M_MAX + 1)[:M_MAX]
    ref_mean = sums / jnp.maximum(cnts, 1.0)[:, None]

    assert jnp.allclose(voxel_feats, ref_mean, atol=1e-4, rtol=1e-4)
    assert int(num_voxels) > 0
    print("KERNEL_OK")
</pallas_src>

<mosaic_0001>
module attributes {stable_mosaic.version = 11 : i64} {
  func.func @_scatter_sum_kernel(%arg0: i32, %arg1: i32, %arg2: memref<1x2048xi32, #tpu.memory_space<vmem>>, %arg3: memref<8x2048xf32, #tpu.memory_space<vmem>>, %arg4: memref<1x8x256xf32, #tpu.memory_space<vmem>>) attributes {dimension_semantics = [#tpu.dimension_semantics<parallel>, #tpu.dimension_semantics<arbitrary>], iteration_bounds = array<i64: 1, 1>, scalar_prefetch = 0 : i64, scratch_operands = 0 : i64, tpu.core_type = #tpu.core_type<tc>, window_params = [{transform_indices = @transform_0, window_bounds = array<i64: 1, 2048>}, {transform_indices = @transform_1, window_bounds = array<i64: 8, 2048>}, {transform_indices = @transform_2, window_bounds = array<i64: 1, 8, 256>}]} {
    %c0_i32 = arith.constant 0 : i32
    %0 = arith.cmpi eq, %arg1, %c0_i32 : i32
    %1 = arith.extui %0 : i1 to i32
    %c0_i32_0 = arith.constant 0 : i32
    %2 = arith.cmpi ne, %1, %c0_i32_0 : i32
    scf.if %2 {
      %cst_17 = arith.constant 0.000000e+00 : f32
      %32 = vector.broadcast %cst_17 : f32 to vector<8x256xf32>
      %c0_18 = arith.constant 0 : index
      %c0_19 = arith.constant 0 : index
      %c0_20 = arith.constant 0 : index
      %33 = vector.load %arg4[%c0_18, %c0_19, %c0_20] : memref<1x8x256xf32, #tpu.memory_space<vmem>>, vector<1x8x256xf32>
      %34 = vector.shape_cast %33 : vector<1x8x256xf32> to vector<8x256xf32>
      %35 = vector.shape_cast %32 : vector<8x256xf32> to vector<1x8x256xf32>
      tpu.vector_store %arg4[%c0_18, %c0_19, %c0_20], %35 {strides = array<i32>} : memref<1x8x256xf32, #tpu.memory_space<vmem>>, vector<1x8x256xf32>,
    } else {
    }
    %c0 = arith.constant 0 : index
    %c0_1 = arith.constant 0 : index
    %3 = vector.load %arg2[%c0, %c0_1] : memref<1x2048xi32, #tpu.memory_space<vmem>>, vector<1x2048xi32>
    %c0_2 = arith.constant 0 : index
    %c0_3 = arith.constant 0 : index
    %4 = vector.load %arg3[%c0_2, %c0_3] : memref<8x2048xf32, #tpu.memory_space<vmem>>, vector<8x2048xf32>
    %5 = tpu.iota {dimensions = array<i32: 0>} : vector<128x2048xi32>
    %c0_i32_4 = arith.constant 0 : i32
    %6 = vector.broadcast %c0_i32_4 : i32 to vector<128x2048xi32>
    %7 = arith.addi %5, %6 : vector<128x2048xi32>
    %8 = vector.broadcast %3 : vector<1x2048xi32> to vector<128x2048xi32>
    %9 = arith.cmpi eq, %8, %7 : vector<128x2048xi32>
    %10 = arith.extui %9 : vector<128x2048xi1> to vector<128x2048xi32>
    %11 = arith.sitofp %10 : vector<128x2048xi32> to vector<128x2048xf32>
    %c0_5 = arith.constant 0 : index
    %c0_6 = arith.constant 0 : index
    %c0_7 = arith.constant 0 : index
    %12 = vector.load %arg4[%c0_5, %c0_6, %c0_7] : memref<1x8x256xf32, #tpu.memory_space<vmem>>, vector<1x8x128xf32>
    %13 = vector.shape_cast %12 : vector<1x8x128xf32> to vector<8x128xf32>
    %cst = arith.constant dense<0.000000e+00> : vector<8x128xf32>
    %14 = tpu.matmul %4, %11, %cst {dimension_numbers = #tpu.dot_dimension_numbers<[1], [1], [0], [0], [0, 0, 1, 0], [], []>} : vector<8x2048xf32>, vector<128x2048xf32>, vector<8x128xf32> -> vector<8x128xf32>
    %15 = arith.addf %13, %14 : vector<8x128xf32>
    %c0_8 = arith.constant 0 : index
    %c0_9 = arith.constant 0 : index
    %c0_10 = arith.constant 0 : index
    %16 = vector.load %arg4[%c0_8, %c0_9, %c0_10] : memref<1x8x256xf32, #tpu.memory_space<vmem>>, vector<1x8x128xf32>
    %17 = vector.shape_cast %16 : vector<1x8x128xf32> to vector<8x128xf32>
    %18 = vector.shape_cast %15 : vector<8x128xf32> to vector<1x8x128xf32>
    tpu.vector_store %arg4[%c0_8, %c0_9, %c0_10], %18 {strides = array<i32>} : memref<1x8x256xf32, #tpu.memory_space<vmem>>, vector<1x8x128xf32>,
    %c128_i32 = arith.constant 128 : i32
    %19 = vector.broadcast %c128_i32 : i32 to vector<128x2048xi32>
    %20 = arith.addi %5, %19 : vector<128x2048xi32>
    %21 = vector.broadcast %3 : vector<1x2048xi32> to vector<128x2048xi32>
    %22 = arith.cmpi eq, %21, %20 : vector<128x2048xi32>
    %23 = arith.extui %22 : vector<128x2048xi1> to vector<128x2048xi32>
    %24 = arith.sitofp %23 : vector<128x2048xi32> to vector<128x2048xf32>
    %c0_11 = arith.constant 0 : index
    %c0_12 = arith.constant 0 : index
    %c128 = arith.constant 128 : index
    %25 = vector.load %arg4[%c0_11, %c0_12, %c128] : memref<1x8x256xf32, #tpu.memory_space<vmem>>, vector<1x8x128xf32>
    %26 = vector.shape_cast %25 : vector<1x8x128xf32> to vector<8x128xf32>
    %cst_13 = arith.constant dense<0.000000e+00> : vector<8x128xf32>
    %27 = tpu.matmul %4, %24, %cst_13 {dimension_numbers = #tpu.dot_dimension_numbers<[1], [1], [0], [0], [0, 0, 1, 0], [], []>} : vector<8x2048xf32>, vector<128x2048xf32>, vector<8x128xf32> -> vector<8x128xf32>
    %28 = arith.addf %26, %27 : vector<8x128xf32>
    %c0_14 = arith.constant 0 : index
    %c0_15 = arith.constant 0 : index
    %c128_16 = arith.constant 128 : index
    %29 = vector.load %arg4[%c0_14, %c0_15, %c128_16] : memref<1x8x256xf32, #tpu.memory_space<vmem>>, vector<1x8x128xf32>
    %30 = vector.shape_cast %29 : vector<1x8x128xf32> to vector<8x128xf32>
    %31 = vector.shape_cast %28 : vector<8x128xf32> to vector<1x8x128xf32>
    tpu.vector_store %arg4[%c0_14, %c0_15, %c128_16], %31 {strides = array<i32>} : memref<1x8x256xf32, #tpu.memory_space<vmem>>, vector<1x8x128xf32>,
    return
  }
  func.func @transform_0(%arg0: i32, %arg1: i32) -> (i32, i32) {
    %c1_i32 = arith.constant 1 : i32
    %0 = arith.muli %arg0, %c1_i32 : i32
    %1 = arith.addi %0, %arg1 : i32
    %c0_i32 = arith.constant 0 : i32
    %c0_i32_0 = arith.constant 0 : i32
    return %c0_i32, %1 : i32, i32
  }
  func.func @transform_1(%arg0: i32, %arg1: i32) -> (i32, i32) {
    %c1_i32 = arith.constant 1 : i32
    %0 = arith.muli %arg0, %c1_i32 : i32
    %1 = arith.addi %0, %arg1 : i32
    %c0_i32 = arith.constant 0 : i32
    %c0_i32_0 = arith.constant 0 : i32
    return %c0_i32, %1 : i32, i32
  }
  func.func @transform_2(%arg0: i32, %arg1: i32) -> (i32, i32, i32) {
    %c0_i32 = arith.constant 0 : i32
    %c0_i32_0 = arith.constant 0 : i32
    %c0_i32_1 = arith.constant 0 : i32
    return %arg0, %c0_i32, %c0_i32_0 : i32, i32, i32
  }
}

</mosaic_0001>

<bundles_post_ra>
// kernel: tpu_custom_call.1
= control target key start
LH: loop header
LB: loop body
LE: loop exit
PB: predicated region body
PF: predicated region fallthrough
CT: control target
= control target key end

     0   :  { %7 = vsyncpa [#allocation3], 0  ;;  %s5705_s0 = inlined_call_operand.hbm [shape: s32[1,2048], index: 0, kind: input, shape index: {}]   ;;  %s5706_s1 = inlined_call_operand.hbm [shape: f32[8,2048], index: 1, kind: input, shape index: {}]   ;;  %s5707_s2 = inlined_call_operand.hbm [shape: f32[1,8,256], index: 2, kind: output, shape index: {}]  }
   0x1   :  { %8 = vsyncpa [#allocation6], 0 }
   0x2   :  { %9 = vsyncpa [#allocation4], 0  ;;  %s3958_s9 = smov [#allocation2]   ;;  %s3959_s11 = smov [#allocation5]  }
   0x3   :  { %s20_s10 = sshll.u32 %s3958_s9, 4  ;;  %s34_s12 = sshll.u32 %s3959_s11, 4  ;;  %s21_s10 = int_to_ptr.vmem [resolvable:$true] %s20_s10  ;;  %s35_s12 = int_to_ptr.vmem [resolvable:$true] %s34_s12 }
   0x4   :  { %s3900_s13 = scalar_lea.vmem %s21_s10, 256  ;;  %p3905_p1 = scmp.lt.s32.totalorder %s21_s10, %s21_s10 }
   0x5   :  { %p3901_p0 = scmp.ne.s32.totalorder %s21_s10, %s3900_s13  ;;  %p3906_p2 = scmp.lt.s32.totalorder %s3900_s13, %s3900_s13 }
   0x7   :  { %p3907_p3 = por %p3906_p2, %p3905_p1 }
   0x9   :  { %p3908_p4 = pnand %p3907_p3, %p3901_p0 }
   0xb   :  { %3911 = shalt.err (!%p3908_p4)
}
   0xc   :  { %23 = dma.hbm_to_vmem [thread:$0]  %s5705_s0, 256, %s21_s10, [#allocation3]  }
   0xd   :  { %s3920_s16 = scalar_lea.vmem %s35_s12, 2048  ;;  %p3925_p6 = scmp.lt.s32.totalorder %s35_s12, %s35_s12 }
   0xe   :  { %p3921_p5 = scmp.ne.s32.totalorder %s35_s12, %s3920_s16  ;;  %p3926_p7 = scmp.lt.s32.totalorder %s3920_s16, %s3920_s16 }
  0x10   :  { %p3927_p8 = por %p3926_p7, %p3925_p6 }
  0x12   :  { %p3928_p9 = pnand %p3927_p8, %p3921_p5 }
  0x14   :  { %3931 = shalt.err (!%p3928_p9)
}
  0x15   :  { %37 = dma.hbm_to_vmem [thread:$0]  %s5706_s1, 2048, %s35_s12, [#allocation6]  }
  0x16   :  { %3952 = dma.done.wait [#allocation3], 256  }
  0x17   :  { %3953 = vsyncadd [#allocation3], 4294967040 }
  0x18   :  { %3954 = dma.done.wait [#allocation6], 2048  }
  0x19   :  { %3955 = vsyncadd [#allocation6], 4294965248  ;;  %v72_v0 = vlaneseq  ;;  %v3992_v7 = vld [vmem:[#allocation2] sm:$0xff]  ;;  %v57_v9 = vld [vmem:[#allocation5 + $0x8] sm:$0xff]  ;;  %v3960_v16 = vmov 1.0   ;;  %s3961_s0 = smov [#allocation7]  }
  0x1a   :  { %986 = vmatprep.mubr.f32.mxu0 %v57_v9  ;;  %v59_v14 = vld [vmem:[#allocation5 + $0x18] sm:$0xff]  ;;  %v56_v38 = vld [vmem:[#allocation5] sm:$0xff]  ;;  %v58_v39 = vld [vmem:[#allocation5 + $0x10] sm:$0xff]  ;;  %s2837_s1 = sshll.u32 %s3961_s0, 4  ;;  %s2838_s1 = int_to_ptr.vmem [resolvable:$true] %s2837_s1 }
  0x1b   :  { %v3983_v1 = vshrl.u32 %v72_v0, 7  ;;  %1056 = vmatprep.mubr.f32.mxu1 %v59_v14  ;;  %v4266_v37 = vld [vmem:[#allocation2 + $0x8] sm:$0xff]  ;;  %v61_v44 = vld [vmem:[#allocation5 + $0x28] sm:$0xff]  ;;  %v60_v50 = vld [vmem:[#allocation5 + $0x20] sm:$0xff]  ;;  %s3932_s19 = scalar_lea.vmem %s2838_s1, 256  ;;  %p3937_p11 = scmp.lt.s32.totalorder %s2838_s1, %s2838_s1 }
  0x1c   :  { %v63_v45 = vld [vmem:[#allocation5 + $0x38] sm:$0xff]  ;;  %v62_v51 = vld [vmem:[#allocation5 + $0x30] sm:$0xff]  ;;  %v65_v52 = vld [vmem:[#allocation5 + $0x48] sm:$0xff]  ;;  %p3933_p10 = scmp.ne.s32.totalorder %s2838_s1, %s3932_s19  ;;  %p3938_p12 = scmp.lt.s32.totalorder %s3932_s19, %s3932_s19 }
  0x1d   :  { %v95_v2 = vsub.s32 1, %v3983_v1  ;;  %v103_v3 = vsub.s32 3, %v3983_v1  ;;  %v91_v4 = vsub.s32 0, %v3983_v1  ;;  %v99_v5 = vsub.s32 2, %v3983_v1  ;;  %v67_v53 = vld [vmem:[#allocation5 + $0x58] sm:$0xff]  ;;  %v64_v54 = vld [vmem:[#allocation5 + $0x40] sm:$0xff] }
  0x1e   :  { %v3990_v6 = vadd.s32 120, %v3983_v1  ;;  %v3995_v8 = vadd.s32 112, %v3983_v1  ;;  %v4018_v15 = vadd.s32 104, %v3983_v1  ;;  %v4047_v17 = vadd.s32 96, %v3983_v1  ;;  %v66_v55 = vld [vmem:[#allocation5 + $0x50] sm:$0xff]  ;;  %v69_v56 = vld [vmem:[#allocation5 + $0x68] sm:$0xff]  ;;  %p3939_p13 = por %p3938_p12, %p3937_p11 }
  0x1f   :  { %v4000_v10 = vrot.slane %v3992_v7, %v95_v2  ;;  %v4005_v11 = vrot.slane %v3992_v7, %v103_v3  ;;  %v4010_v12 = vrot.slane %v3992_v7, %v91_v4  ;;  %v4015_v13 = vrot.slane %v3992_v7, %v99_v5  ;;  %v71_v57 = vld [vmem:[#allocation5 + $0x78] sm:$0xff]  ;;  %v68_v60 = vld [vmem:[#allocation5 + $0x60] sm:$0xff]  ;;  %v70_v61 = vld [vmem:[#allocation5 + $0x70] sm:$0xff] }
  0x20   :  { %v4062_v18 = vadd.s32 88, %v3983_v1  ;;  %v4077_v19 = vadd.s32 80, %v3983_v1  ;;  %v4092_v20 = vadd.s32 72, %v3983_v1  ;;  %v4107_v21 = vadd.s32 64, %v3983_v1  ;;  %p3940_p0 = pnand %p3939_p13, %p3933_p10 }
  0x21   :  { %vm394_vm0 = vcmp.eq.s32.totalorder %v4000_v10, %v3990_v6  ;;  %vm396_vm1 = vcmp.eq.s32.totalorder %v4005_v11, %v3990_v6  ;;  %vm393_vm2 = vcmp.eq.s32.totalorder %v4010_v12, %v3990_v6  ;;  %vm395_vm3 = vcmp.eq.s32.totalorder %v4015_v13, %v3990_v6 }
  0x22   :  { %3103 = vmatprep.subr.msk.mxu0 %vm394_vm0, %v3960_v16  ;;  %3135 = vmatprep.subr.msk.mxu1 %vm396_vm1, %v3960_v16  ;;  %vm378_vm4 = vcmp.eq.s32.totalorder %v4000_v10, %v3995_v8  ;;  %vm380_vm5 = vcmp.eq.s32.totalorder %v4005_v11, %v3995_v8  ;;  %vm377_vm6 = vcmp.eq.s32.totalorder %v4010_v12, %v3995_v8  ;;  %v4122_v22 = vadd.s32 56, %v3983_v1 }
  0x23   :  { %3104 = vmatpush1.xpose.msk.msra.mxu0 %vm393_vm2, %v3960_v16  ;;  %3136 = vmatpush1.xpose.msk.msra.mxu1 %vm395_vm3, %v3960_v16  ;;  %vm379_vm7 = vcmp.eq.s32.totalorder %v4015_v13, %v3995_v8  ;;  %vm362_vm8 = vcmp.eq.s32.totalorder %v4000_v10, %v4018_v15  ;;  %vm364_vm9 = vcmp.eq.s32.totalorder %v4005_v11, %v4018_v15  ;;  %v4137_v23 = vadd.s32 48, %v3983_v1 }
  0x24   :  { %3105 = vmatprep.subr.msk.mxu0 %vm378_vm4, %v3960_v16  ;;  %3137 = vmatprep.subr.msk.mxu1 %vm380_vm5, %v3960_v16  ;;  %vm361_vm10 = vcmp.eq.s32.totalorder %v4010_v12, %v4018_v15  ;;  %vm363_vm11 = vcmp.eq.s32.totalorder %v4015_v13, %v4018_v15  ;;  %vm346_vm12 = vcmp.eq.s32.totalorder %v4000_v10, %v4047_v17  ;;  %v4152_v24 = vadd.s32 40, %v3983_v1 }
  0x25   :  { %vm348_vm13 = vcmp.eq.s32.totalorder %v4005_v11, %v4047_v17  ;;  %vm345_vm14 = vcmp.eq.s32.totalorder %v4010_v12, %v4047_v17  ;;  %vm347_vm15 = vcmp.eq.s32.totalorder %v4015_v13, %v4047_v17  ;;  %vm330_vm0 = vcmp.eq.s32.totalorder %v4000_v10, %v4062_v18 }
  0x26   :  { %vm332_vm1 = vcmp.eq.s32.totalorder %v4005_v11, %v4062_v18  ;;  %vm329_vm2 = vcmp.eq.s32.totalorder %v4010_v12, %v4062_v18  ;;  %vm331_vm3 = vcmp.eq.s32.totalorder %v4015_v13, %v4062_v18  ;;  %vm314_vm4 = vcmp.eq.s32.totalorder %v4000_v10, %v4077_v19 }
  0x27   :  { %3106 = vmatpush1.xpose.msk.msra.mxu0 %vm377_vm6, %v3960_v16  ;;  %3138 = vmatpush1.xpose.msk.msra.mxu1 %vm379_vm7, %v3960_v16  ;;  %vm316_vm5 = vcmp.eq.s32.totalorder %v4005_v11, %v4077_v19  ;;  %vm313_vm6 = vcmp.eq.s32.totalorder %v4010_v12, %v4077_v19  ;;  %vm315_vm7 = vcmp.eq.s32.totalorder %v4015_v13, %v4077_v19  ;;  %v4167_v25 = vadd.s32 32, %v3983_v1 }
  0x28   :  { %3107 = vmatprep.subr.msk.mxu0 %vm362_vm8, %v3960_v16  ;;  %3139 = vmatprep.subr.msk.mxu1 %vm364_vm9, %v3960_v16  ;;  %vm298_vm8 = vcmp.eq.s32.totalorder %v4000_v10, %v4092_v20  ;;  %vm300_vm9 = vcmp.eq.s32.totalorder %v4005_v11, %v4092_v20  ;;  %v4182_v26 = vadd.s32 24, %v3983_v1  ;;  %v4197_v27 = vadd.s32 16, %v3983_v1 }
  0x29   :  { %v4212_v28 = vadd.s32 8, %v3983_v1  ;;  %v111_v29 = vsub.s32 5, %v3983_v1  ;;  %v119_v30 = vsub.s32 7, %v3983_v1  ;;  %v107_v31 = vsub.s32 4, %v3983_v1 }
  0x2a   :  { %v115_v32 = vsub.s32 6, %v3983_v1  ;;  %v4463_v46 = vrot.slane %v4266_v37, %v95_v2  ;;  %v4468_v47 = vrot.slane %v4266_v37, %v103_v3  ;;  %v4481_v48 = vrot.slane %v4266_v37, %v91_v4 }
  0x2b   :  { %3108 = vmatpush1.xpose.msk.msra.mxu0 %vm361_vm10, %v3960_v16  ;;  %3140 = vmatpush1.xpose.msk.msra.mxu1 %vm363_vm11, %v3960_v16  ;;  %vm297_vm10 = vcmp.eq.s32.totalorder %v4010_v12, %v4092_v20  ;;  %vm299_vm11 = vcmp.eq.s32.totalorder %v4015_v13, %v4092_v20  ;;  %v4243_v33 = vrot.slane %v3992_v7, %v111_v29  ;;  %v4865_v58 = vadd.s32 128, %v3990_v6 }
  0x2c   :  { %3109 = vmatprep.subr.msk.mxu0 %vm346_vm12, %v3960_v16  ;;  %3141 = vmatprep.subr.msk.mxu1 %vm348_vm13, %v3960_v16  ;;  %vm282_vm12 = vcmp.eq.s32.totalorder %v4000_v10, %v4107_v21  ;;  %vm284_vm13 = vcmp.eq.s32.totalorder %v4005_v11, %v4107_v21  ;;  %v4246_v34 = vrot.slane %v3992_v7, %v119_v30  ;;  %v4880_v59 = vadd.s32 128, %v3995_v8 }
  0x2d   :  { %v4251_v35 = vrot.slane %v3992_v7, %v107_v31  ;;  %v4260_v36 = vrot.slane %v3992_v7, %v115_v32  ;;  %v4273_v40 = vrot.slane %v4266_v37, %v111_v29  ;;  %v4276_v41 = vrot.slane %v4266_v37, %v119_v30  ;;  %v3877_v7 = vld [vmem:[#allocation5 + $0x18] sm:$0xff] }
  0x2e   :  { %v4283_v42 = vrot.slane %v4266_v37, %v107_v31  ;;  %v4286_v43 = vrot.slane %v4266_v37, %v115_v32  ;;  %v4486_v49 = vrot.slane %v4266_v37, %v99_v5  ;;  %v4895_v62 = vadd.s32 128, %v4018_v15  ;;  %v3881_v29 = vld [vmem:[#allocation5 + $0x38] sm:$0xff]  ;;  %v3882_v31 = vld [vmem:[#allocation5 + $0x20] sm:$0xff] }
  0x2f   :  { %3110 = vmatpush1.xpose.msk.msra.mxu0 %vm345_vm14, %v3960_v16  ;;  %3142 = vmatpush1.xpose.msk.msra.mxu1 %vm347_vm15, %v3960_v16  ;;  %vm281_vm14 = vcmp.eq.s32.totalorder %v4010_v12, %v4107_v21  ;;  %vm283_vm15 = vcmp.eq.s32.totalorder %v4015_v13, %v4107_v21  ;;  %v4912_v5 = vadd.s32 128, %v4047_v17  ;;  %v4942_v9 = vadd.s32 128, %v4077_v19  ;;  %v3885_v37 = vld [vmem:[#allocation5 + $0x58] sm:$0xff] }
  0x30   :  { %3111 = vmatprep.subr.msk.mxu0 %vm330_vm0, %v3960_v16  ;;  %3143 = vmatprep.subr.msk.mxu1 %vm332_vm1, %v3960_v16  ;;  %vm266_vm0 = vcmp.eq.s32.totalorder %v4000_v10, %v4122_v22  ;;  %vm268_vm1 = vcmp.eq.s32.totalorder %v4005_v11, %v4122_v22  ;;  %v4957_v14 = vadd.s32 128, %v4092_v20 }
  0x33   :  { %3112 = vmatpush1.xpose.msk.msra.mxu0 %vm329_vm2, %v3960_v16  ;;  %3144 = vmatpush1.xpose.msk.msra.mxu1 %vm331_vm3, %v3960_v16  ;;  %vm265_vm2 = vcmp.eq.s32.totalorder %v4010_v12, %v4122_v22  ;;  %vm267_vm3 = vcmp.eq.s32.totalorder %v4015_v13, %v4122_v22 }
  0x34   :  { %3113 = vmatprep.subr.msk.mxu0 %vm314_vm4, %v3960_v16  ;;  %3145 = vmatprep.subr.msk.mxu1 %vm316_vm5, %v3960_v16  ;;  %vm250_vm4 = vcmp.eq.s32.totalorder %v4000_v10, %v4137_v23  ;;  %vm252_vm5 = vcmp.eq.s32.totalorder %v4005_v11, %v4137_v23 }
  0x37   :  { %3114 = vmatpush1.xpose.msk.msra.mxu0 %vm313_vm6, %v3960_v16  ;;  %3146 = vmatpush1.xpose.msk.msra.mxu1 %vm315_vm7, %v3960_v16  ;;  %vm249_vm6 = vcmp.eq.s32.totalorder %v4010_v12, %v4137_v23  ;;  %vm251_vm7 = vcmp.eq.s32.totalorder %v4015_v13, %v4137_v23 }
  0x38   :  { %3115 = vmatprep.subr.msk.mxu0 %vm298_vm8, %v3960_v16  ;;  %3147 = vmatprep.subr.msk.mxu1 %vm300_vm9, %v3960_v16  ;;  %vm234_vm8 = vcmp.eq.s32.totalorder %v4000_v10, %v4152_v24  ;;  %vm236_vm9 = vcmp.eq.s32.totalorder %v4005_v11, %v4152_v24 }
  0x3b   :  { %3116 = vmatpush1.xpose.msk.msra.mxu0 %vm297_vm10, %v3960_v16  ;;  %3148 = vmatpush1.xpose.msk.msra.mxu1 %vm299_vm11, %v3960_v16  ;;  %vm233_vm10 = vcmp.eq.s32.totalorder %v4010_v12, %v4152_v24  ;;  %vm235_vm11 = vcmp.eq.s32.totalorder %v4015_v13, %v4152_v24 }
  0x3c   :  { %3117 = vmatprep.subr.msk.mxu0 %vm282_vm12, %v3960_v16  ;;  %3149 = vmatprep.subr.msk.mxu1 %vm284_vm13, %v3960_v16  ;;  %vm218_vm12 = vcmp.eq.s32.totalorder %v4000_v10, %v4167_v25  ;;  %vm220_vm13 = vcmp.eq.s32.totalorder %v4005_v11, %v4167_v25 }
  0x3f   :  { %3118 = vmatpush1.xpose.msk.msra.mxu0 %vm281_vm14, %v3960_v16  ;;  %3150 = vmatpush1.xpose.msk.msra.mxu1 %vm283_vm15, %v3960_v16  ;;  %vm217_vm14 = vcmp.eq.s32.totalorder %v4010_v12, %v4167_v25  ;;  %vm219_vm15 = vcmp.eq.s32.totalorder %v4015_v13, %v4167_v25 }
  0x40   :  { %3119 = vmatprep.subr.msk.mxu0 %vm266_vm0, %v3960_v16  ;;  %3151 = vmatprep.subr.msk.mxu1 %vm268_vm1, %v3960_v16  ;;  %vm202_vm0 = vcmp.eq.s32.totalorder %v4000_v10, %v4182_v26  ;;  %vm204_vm1 = vcmp.eq.s32.totalorder %v4005_v11, %v4182_v26 }
  0x43   :  { %3120 = vmatpush1.xpose.msk.msra.mxu0 %vm265_vm2, %v3960_v16  ;;  %3152 = vmatpush1.xpose.msk.msra.mxu1 %vm267_vm3, %v3960_v16  ;;  %vm201_vm2 = vcmp.eq.s32.totalorder %v4010_v12, %v4182_v26  ;;  %vm203_vm3 = vcmp.eq.s32.totalorder %v4015_v13, %v4182_v26 }
  0x44   :  { %3121 = vmatprep.subr.msk.mxu0 %vm250_vm4, %v3960_v16  ;;  %3153 = vmatprep.subr.msk.mxu1 %vm252_vm5, %v3960_v16  ;;  %vm186_vm4 = vcmp.eq.s32.totalorder %v4000_v10, %v4197_v27  ;;  %vm188_vm5 = vcmp.eq.s32.totalorder %v4005_v11, %v4197_v27 }
  0x47   :  { %3122 = vmatpush1.xpose.msk.msra.mxu0 %vm249_vm6, %v3960_v16  ;;  %3154 = vmatpush1.xpose.msk.msra.mxu1 %vm251_vm7, %v3960_v16  ;;  %vm185_vm6 = vcmp.eq.s32.totalorder %v4010_v12, %v4197_v27  ;;  %vm187_vm7 = vcmp.eq.s32.totalorder %v4015_v13, %v4197_v27 }
  0x48   :  { %3123 = vmatprep.subr.msk.mxu0 %vm234_vm8, %v3960_v16  ;;  %3155 = vmatprep.subr.msk.mxu1 %vm236_vm9, %v3960_v16  ;;  %vm170_vm8 = vcmp.eq.s32.totalorder %v4000_v10, %v4212_v28  ;;  %vm172_vm9 = vcmp.eq.s32.totalorder %v4005_v11, %v4212_v28 }
  0x4b   :  { %3124 = vmatpush1.xpose.msk.msra.mxu0 %vm233_vm10, %v3960_v16  ;;  %3156 = vmatpush1.xpose.msk.msra.mxu1 %vm235_vm11, %v3960_v16  ;;  %vm169_vm10 = vcmp.eq.s32.totalorder %v4010_v12, %v4212_v28  ;;  %vm171_vm11 = vcmp.eq.s32.totalorder %v4015_v13, %v4212_v28 }
  0x4c   :  { %3125 = vmatprep.subr.msk.mxu0 %vm218_vm12, %v3960_v16  ;;  %3157 = vmatprep.subr.msk.mxu1 %vm220_vm13, %v3960_v16  ;;  %vm154_vm12 = vcmp.eq.s32.totalorder %v4000_v10, %v3983_v1  ;;  %vm156_vm13 = vcmp.eq.s32.totalorder %v4005_v11, %v3983_v1 }
  0x4f   :  { %3126 = vmatpush1.xpose.msk.msra.mxu0 %vm217_vm14, %v3960_v16  ;;  %3158 = vmatpush1.xpose.msk.msra.mxu1 %vm219_vm15, %v3960_v16  ;;  %vm153_vm14 = vcmp.eq.s32.totalorder %v4010_v12, %v3983_v1  ;;  %vm155_vm15 = vcmp.eq.s32.totalorder %v4015_v13, %v3983_v1 }
  0x50   :  { %3127 = vmatprep.subr.msk.mxu0 %vm202_vm0, %v3960_v16  ;;  %3159 = vmatprep.subr.msk.mxu1 %vm204_vm1, %v3960_v16  ;;  %vm398_vm0 = vcmp.eq.s32.totalorder %v4243_v33, %v3990_v6  ;;  %vm400_vm1 = vcmp.eq.s32.totalorder %v4246_v34, %v3990_v6 }
  0x53   :  { %3128 = vmatpush1.xpose.msk.msra.mxu0 %vm201_vm2, %v3960_v16  ;;  %3160 = vmatpush1.xpose.msk.msra.mxu1 %vm203_vm3, %v3960_v16  ;;  %vm397_vm2 = vcmp.eq.s32.totalorder %v4251_v35, %v3990_v6  ;;  %vm399_vm3 = vcmp.eq.s32.totalorder %v4260_v36, %v3990_v6 }
  0x54   :  { %3129 = vmatprep.subr.msk.mxu0 %vm186_vm4, %v3960_v16  ;;  %3161 = vmatprep.subr.msk.mxu1 %vm188_vm5, %v3960_v16  ;;  %vm382_vm4 = vcmp.eq.s32.totalorder %v4243_v33, %v3995_v8  ;;  %vm384_vm5 = vcmp.eq.s32.totalorder %v4246_v34, %v3995_v8 }
  0x57   :  { %3130 = vmatpush1.xpose.msk.msra.mxu0 %vm185_vm6, %v3960_v16  ;;  %3162 = vmatpush1.xpose.msk.msra.mxu1 %vm187_vm7, %v3960_v16  ;;  %vm381_vm6 = vcmp.eq.s32.totalorder %v4251_v35, %v3995_v8  ;;  %vm383_vm7 = vcmp.eq.s32.totalorder %v4260_v36, %v3995_v8 }
  0x58   :  { %3131 = vmatprep.subr.msk.mxu0 %vm170_vm8, %v3960_v16  ;;  %3163 = vmatprep.subr.msk.mxu1 %vm172_vm9, %v3960_v16  ;;  %vm366_vm8 = vcmp.eq.s32.totalorder %v4243_v33, %v4018_v15  ;;  %vm368_vm9 = vcmp.eq.s32.totalorder %v4246_v34, %v4018_v15 }
  0x5b   :  { %3132 = vmatpush1.xpose.msk.msra.mxu0 %vm169_vm10, %v3960_v16  ;;  %3164 = vmatpush1.xpose.msk.msra.mxu1 %vm171_vm11, %v3960_v16  ;;  %vm365_vm10 = vcmp.eq.s32.totalorder %v4251_v35, %v4018_v15  ;;  %vm367_vm11 = vcmp.eq.s32.totalorder %v4260_v36, %v4018_v15 }
  0x5c   :  { %3133 = vmatprep.subr.msk.mxu0 %vm154_vm12, %v3960_v16  ;;  %3165 = vmatprep.subr.msk.mxu1 %vm156_vm13, %v3960_v16  ;;  %vm350_vm12 = vcmp.eq.s32.totalorder %v4243_v33, %v4047_v17  ;;  %vm352_vm13 = vcmp.eq.s32.totalorder %v4246_v34, %v4047_v17 }
  0x5f   :  { %3134 = vmatpush1.xpose.msk.msra.mxu0 %vm153_vm14, %v3960_v16  ;;  %3166 = vmatpush1.xpose.msk.msra.mxu1 %vm155_vm15, %v3960_v16  ;;  %vm349_vm14 = vcmp.eq.s32.totalorder %v4251_v35, %v4047_v17  ;;  %vm351_vm15 = vcmp.eq.s32.totalorder %v4260_v36, %v4047_v17 }
  0x60   :  { %3167 = vmatprep.subr.msk.mxu0 %vm398_vm0, %v3960_v16  ;;  %3199 = vmatprep.subr.msk.mxu1 %vm400_vm1, %v3960_v16  ;;  %vm334_vm0 = vcmp.eq.s32.totalorder %v4243_v33, %v4062_v18  ;;  %vm336_vm1 = vcmp.eq.s32.totalorder %v4246_v34, %v4062_v18 }
  0x62   :  { %987 = vmatmul.mubr.f32.vlgmr.msra.gmra.mxu0 %v56_v38  ;;  %1057 = vmatmul.mubr.f32.vlgmr.msra.gmra.mxu1 %v58_v39 }
  0x63   :  { %3168 = vmatpush1.xpose.msk.msra.mxu0 %vm397_vm2, %v3960_v16  ;;  %3200 = vmatpush1.xpose.msk.msra.mxu1 %vm399_vm3, %v3960_v16  ;;  %vm333_vm2 = vcmp.eq.s32.totalorder %v4251_v35, %v4062_v18  ;;  %vm335_vm3 = vcmp.eq.s32.totalorder %v4260_v36, %v4062_v18 }
  0x64   :  { %3169 = vmatprep.subr.msk.mxu0 %vm382_vm4, %v3960_v16  ;;  %3201 = vmatprep.subr.msk.mxu1 %vm384_vm5, %v3960_v16  ;;  %vm318_vm4 = vcmp.eq.s32.totalorder %v4243_v33, %v4077_v19  ;;  %vm320_vm5 = vcmp.eq.s32.totalorder %v4246_v34, %v4077_v19 }
  0x65   :  { %1126 = vmatprep.mubr.f32.mxu0 %v61_v44  ;;  %1196 = vmatprep.mubr.f32.mxu1 %v63_v45  ;;  %v3886_v45 = vld [vmem:[#allocation5 + $0x40] sm:$0xff] }
  0x67   :  { %3170 = vmatpush1.xpose.msk.msra.mxu0 %vm381_vm6, %v3960_v16  ;;  %3202 = vmatpush1.xpose.msk.msra.mxu1 %vm383_vm7, %v3960_v16  ;;  %vm317_vm6 = vcmp.eq.s32.totalorder %v4251_v35, %v4077_v19  ;;  %vm319_vm7 = vcmp.eq.s32.totalorder %v4260_v36, %v4077_v19 }
  0x68   :  { %3171 = vmatprep.subr.msk.mxu0 %vm366_vm8, %v3960_v16  ;;  %3203 = vmatprep.subr.msk.mxu1 %vm368_vm9, %v3960_v16  ;;  %vm302_vm8 = vcmp.eq.s32.totalorder %v4243_v33, %v4092_v20  ;;  %vm304_vm9 = vcmp.eq.s32.totalorder %v4246_v34, %v4092_v20 }
  0x6b   :  { %3172 = vmatpush1.xpose.msk.msra.mxu0 %vm365_vm10, %v3960_v16  ;;  %3204 = vmatpush1.xpose.msk.msra.mxu1 %vm367_vm11, %v3960_v16  ;;  %vm301_vm10 = vcmp.eq.s32.totalorder %v4251_v35, %v4092_v20  ;;  %vm303_vm11 = vcmp.eq.s32.totalorder %v4260_v36, %v4092_v20 }
  0x6c   :  { %3173 = vmatprep.subr.msk.mxu0 %vm350_vm12, %v3960_v16  ;;  %3205 = vmatprep.subr.msk.mxu1 %vm352_vm13, %v3960_v16  ;;  %vm286_vm12 = vcmp.eq.s32.totalorder %v4243_v33, %v4107_v21  ;;  %vm288_vm13 = vcmp.eq.s32.totalorder %v4246_v34, %v4107_v21 }
  0x6f   :  { %3174 = vmatpush1.xpose.msk.msra.mxu0 %vm349_vm14, %v3960_v16  ;;  %3206 = vmatpush1.xpose.msk.msra.mxu1 %vm351_vm15, %v3960_v16  ;;  %vm285_vm14 = vcmp.eq.s32.totalorder %v4251_v35, %v4107_v21  ;;  %vm287_vm15 = vcmp.eq.s32.totalorder %v4260_v36, %v4107_v21 }
  0x70   :  { %3175 = vmatprep.subr.msk.mxu0 %vm334_vm0, %v3960_v16  ;;  %3207 = vmatprep.subr.msk.mxu1 %vm336_vm1, %v3960_v16  ;;  %vm270_vm0 = vcmp.eq.s32.totalorder %v4243_v33, %v4122_v22  ;;  %vm272_vm1 = vcmp.eq.s32.totalorder %v4246_v34, %v4122_v22 }
  0x73   :  { %3176 = vmatpush1.xpose.msk.msra.mxu0 %vm333_vm2, %v3960_v16  ;;  %3208 = vmatpush1.xpose.msk.msra.mxu1 %vm335_vm3, %v3960_v16  ;;  %vm269_vm2 = vcmp.eq.s32.totalorder %v4251_v35, %v4122_v22  ;;  %vm271_vm3 = vcmp.eq.s32.totalorder %v4260_v36, %v4122_v22 }
  0x74   :  { %3177 = vmatprep.subr.msk.mxu0 %vm318_vm4, %v3960_v16  ;;  %3209 = vmatprep.subr.msk.mxu1 %vm320_vm5, %v3960_v16  ;;  %vm254_vm4 = vcmp.eq.s32.totalorder %v4243_v33, %v4137_v23  ;;  %vm256_vm5 = vcmp.eq.s32.totalorder %v4246_v34, %v4137_v23 }
  0x77   :  { %3178 = vmatpush1.xpose.msk.msra.mxu0 %vm317_vm6, %v3960_v16  ;;  %3210 = vmatpush1.xpose.msk.msra.mxu1 %vm319_vm7, %v3960_v16  ;;  %vm253_vm6 = vcmp.eq.s32.totalorder %v4251_v35, %v4137_v23  ;;  %vm255_vm7 = vcmp.eq.s32.totalorder %v4260_v36, %v4137_v23 }
  0x78   :  { %3179 = vmatprep.subr.msk.mxu0 %vm302_vm8, %v3960_v16  ;;  %3211 = vmatprep.subr.msk.mxu1 %vm304_vm9, %v3960_v16  ;;  %vm238_vm8 = vcmp.eq.s32.totalorder %v4243_v33, %v4152_v24  ;;  %vm240_vm9 = vcmp.eq.s32.totalorder %v4246_v34, %v4152_v24 }
  0x7b   :  { %3180 = vmatpush1.xpose.msk.msra.mxu0 %vm301_vm10, %v3960_v16  ;;  %3212 = vmatpush1.xpose.msk.msra.mxu1 %vm303_vm11, %v3960_v16  ;;  %vm237_vm10 = vcmp.eq.s32.totalorder %v4251_v35, %v4152_v24  ;;  %vm239_vm11 = vcmp.eq.s32.totalorder %v4260_v36, %v4152_v24 }
  0x7c   :  { %3181 = vmatprep.subr.msk.mxu0 %vm286_vm12, %v3960_v16  ;;  %3213 = vmatprep.subr.msk.mxu1 %vm288_vm13, %v3960_v16  ;;  %vm222_vm12 = vcmp.eq.s32.totalorder %v4243_v33, %v4167_v25  ;;  %vm224_vm13 = vcmp.eq.s32.totalorder %v4246_v34, %v4167_v25 }
  0x7f   :  { %3182 = vmatpush1.xpose.msk.msra.mxu0 %vm285_vm14, %v3960_v16  ;;  %3214 = vmatpush1.xpose.msk.msra.mxu1 %vm287_vm15, %v3960_v16  ;;  %vm221_vm14 = vcmp.eq.s32.totalorder %v4251_v35, %v4167_v25  ;;  %vm223_vm15 = vcmp.eq.s32.totalorder %v4260_v36, %v4167_v25 }
  0x80   :  { %3183 = vmatprep.subr.msk.mxu0 %vm270_vm0, %v3960_v16  ;;  %3215 = vmatprep.subr.msk.mxu1 %vm272_vm1, %v3960_v16  ;;  %vm206_vm0 = vcmp.eq.s32.totalorder %v4243_v33, %v4182_v26  ;;  %vm208_vm1 = vcmp.eq.s32.totalorder %v4246_v34, %v4182_v26 }
  0x83   :  { %3184 = vmatpush1.xpose.msk.msra.mxu0 %vm269_vm2, %v3960_v16  ;;  %3216 = vmatpush1.xpose.msk.msra.mxu1 %vm271_vm3, %v3960_v16  ;;  %vm205_vm2 = vcmp.eq.s32.totalorder %v4251_v35, %v4182_v26  ;;  %vm207_vm3 = vcmp.eq.s32.totalorder %v4260_v36, %v4182_v26 }
  0x84   :  { %3185 = vmatprep.subr.msk.mxu0 %vm254_vm4, %v3960_v16  ;;  %3217 = vmatprep.subr.msk.mxu1 %vm256_vm5, %v3960_v16  ;;  %vm190_vm4 = vcmp.eq.s32.totalorder %v4243_v33, %v4197_v27  ;;  %vm192_vm5 = vcmp.eq.s32.totalorder %v4246_v34, %v4197_v27 }
  0x87   :  { %3186 = vmatpush1.xpose.msk.msra.mxu0 %vm253_vm6, %v3960_v16  ;;  %3218 = vmatpush1.xpose.msk.msra.mxu1 %vm255_vm7, %v3960_v16  ;;  %vm189_vm6 = vcmp.eq.s32.totalorder %v4251_v35, %v4197_v27  ;;  %vm191_vm7 = vcmp.eq.s32.totalorder %v4260_v36, %v4197_v27 }
  0x88   :  { %3187 = vmatprep.subr.msk.mxu0 %vm238_vm8, %v3960_v16  ;;  %3219 = vmatprep.subr.msk.mxu1 %vm240_vm9, %v3960_v16  ;;  %vm174_vm8 = vcmp.eq.s32.totalorder %v4243_v33, %v4212_v28  ;;  %vm176_vm9 = vcmp.eq.s32.totalorder %v4246_v34, %v4212_v28 }
  0x8b   :  { %3188 = vmatpush1.xpose.msk.msra.mxu0 %vm237_vm10, %v3960_v16  ;;  %3220 = vmatpush1.xpose.msk.msra.mxu1 %vm239_vm11, %v3960_v16  ;;  %vm173_vm10 = vcmp.eq.s32.totalorder %v4251_v35, %v4212_v28  ;;  %vm175_vm11 = vcmp.eq.s32.totalorder %v4260_v36, %v4212_v28 }
  0x8c   :  { %3189 = vmatprep.subr.msk.mxu0 %vm222_vm12, %v3960_v16  ;;  %3221 = vmatprep.subr.msk.mxu1 %vm224_vm13, %v3960_v16  ;;  %vm158_vm12 = vcmp.eq.s32.totalorder %v4243_v33, %v3983_v1  ;;  %vm160_vm13 = vcmp.eq.s32.totalorder %v4246_v34, %v3983_v1 }
  0x8f   :  { %3190 = vmatpush1.xpose.msk.msra.mxu0 %vm221_vm14, %v3960_v16  ;;  %3222 = vmatpush1.xpose.msk.msra.mxu1 %vm223_vm15, %v3960_v16  ;;  %vm157_vm14 = vcmp.eq.s32.totalorder %v4251_v35, %v3983_v1  ;;  %vm159_vm15 = vcmp.eq.s32.totalorder %v4260_v36, %v3983_v1 }
  0x90   :  { %3191 = vmatprep.subr.msk.mxu0 %vm206_vm0, %v3960_v16  ;;  %3223 = vmatprep.subr.msk.mxu1 %vm208_vm1, %v3960_v16  ;;  %vm402_vm0 = vcmp.eq.s32.totalorder %v4463_v46, %v3990_v6  ;;  %vm404_vm1 = vcmp.eq.s32.totalorder %v4468_v47, %v3990_v6 }
  0x93   :  { %3192 = vmatpush1.xpose.msk.msra.mxu0 %vm205_vm2, %v3960_v16  ;;  %3224 = vmatpush1.xpose.msk.msra.mxu1 %vm207_vm3, %v3960_v16  ;;  %vm401_vm2 = vcmp.eq.s32.totalorder %v4481_v48, %v3990_v6  ;;  %vm403_vm3 = vcmp.eq.s32.totalorder %v4486_v49, %v3990_v6 }
  0x94   :  { %3193 = vmatprep.subr.msk.mxu0 %vm190_vm4, %v3960_v16  ;;  %3225 = vmatprep.subr.msk.mxu1 %vm192_vm5, %v3960_v16  ;;  %vm386_vm4 = vcmp.eq.s32.totalorder %v4463_v46, %v3995_v8  ;;  %vm388_vm5 = vcmp.eq.s32.totalorder %v4468_v47, %v3995_v8 }
  0x97   :  { %3194 = vmatpush1.xpose.msk.msra.mxu0 %vm189_vm6, %v3960_v16  ;;  %3226 = vmatpush1.xpose.msk.msra.mxu1 %vm191_vm7, %v3960_v16  ;;  %vm385_vm6 = vcmp.eq.s32.totalorder %v4481_v48, %v3995_v8  ;;  %vm387_vm7 = vcmp.eq.s32.totalorder %v4486_v49, %v3995_v8 }
  0x98   :  { %3195 = vmatprep.subr.msk.mxu0 %vm174_vm8, %v3960_v16  ;;  %3227 = vmatprep.subr.msk.mxu1 %vm176_vm9, %v3960_v16  ;;  %vm370_vm8 = vcmp.eq.s32.totalorder %v4463_v46, %v4018_v15  ;;  %vm372_vm9 = vcmp.eq.s32.totalorder %v4468_v47, %v4018_v15 }
  0x9b   :  { %3196 = vmatpush1.xpose.msk.msra.mxu0 %vm173_vm10, %v3960_v16  ;;  %3228 = vmatpush1.xpose.msk.msra.mxu1 %vm175_vm11, %v3960_v16  ;;  %vm369_vm10 = vcmp.eq.s32.totalorder %v4481_v48, %v4018_v15  ;;  %vm371_vm11 = vcmp.eq.s32.totalorder %v4486_v49, %v4018_v15 }
  0x9c   :  { %3197 = vmatprep.subr.msk.mxu0 %vm158_vm12, %v3960_v16  ;;  %3229 = vmatprep.subr.msk.mxu1 %vm160_vm13, %v3960_v16  ;;  %vm354_vm12 = vcmp.eq.s32.totalorder %v4463_v46, %v4047_v17  ;;  %vm356_vm13 = vcmp.eq.s32.totalorder %v4468_v47, %v4047_v17 }
  0x9f   :  { %3198 = vmatpush1.xpose.msk.msra.mxu0 %vm157_vm14, %v3960_v16  ;;  %3230 = vmatpush1.xpose.msk.msra.mxu1 %vm159_vm15, %v3960_v16  ;;  %vm353_vm14 = vcmp.eq.s32.totalorder %v4481_v48, %v4047_v17  ;;  %vm355_vm15 = vcmp.eq.s32.totalorder %v4486_v49, %v4047_v17 }
  0xa0   :  { %3231 = vmatprep.subr.msk.mxu0 %vm402_vm0, %v3960_v16  ;;  %3263 = vmatprep.subr.msk.mxu1 %vm404_vm1, %v3960_v16  ;;  %vm338_vm0 = vcmp.eq.s32.totalorder %v4463_v46, %v4062_v18  ;;  %vm340_vm1 = vcmp.eq.s32.totalorder %v4468_v47, %v4062_v18 }
  0xa2   :  { %1127 = vmatmul.mubr.f32.vlgmr.msra.gmra.mxu0 %v60_v50  ;;  %1197 = vmatmul.mubr.f32.vlgmr.msra.gmra.mxu1 %v62_v51 }
  0xa3   :  { %3232 = vmatpush1.xpose.msk.msra.mxu0 %vm401_vm2, %v3960_v16  ;;  %3264 = vmatpush1.xpose.msk.msra.mxu1 %vm403_vm3, %v3960_v16  ;;  %vm337_vm2 = vcmp.eq.s32.totalorder %v4481_v48, %v4062_v18  ;;  %vm339_vm3 = vcmp.eq.s32.totalorder %v4486_v49, %v4062_v18 }
  0xa4   :  { %3233 = vmatprep.subr.msk.mxu0 %vm386_vm4, %v3960_v16  ;;  %3265 = vmatprep.subr.msk.mxu1 %vm388_vm5, %v3960_v16  ;;  %vm322_vm4 = vcmp.eq.s32.totalorder %v4463_v46, %v4077_v19  ;;  %vm324_vm5 = vcmp.eq.s32.totalorder %v4468_v47, %v4077_v19 }
  0xa5   :  { %1266 = vmatprep.mubr.f32.mxu0 %v65_v52  ;;  %1336 = vmatprep.mubr.f32.mxu1 %v67_v53  ;;  %v3888_v52 = vld [vmem:[#allocation5 + $0x68] sm:$0xff]  ;;  %v3889_v53 = vld [vmem:[#allocation5 + $0x78] sm:$0xff] }
  0xa7   :  { %3234 = vmatpush1.xpose.msk.msra.mxu0 %vm385_vm6, %v3960_v16  ;;  %3266 = vmatpush1.xpose.msk.msra.mxu1 %vm387_vm7, %v3960_v16  ;;  %vm321_vm6 = vcmp.eq.s32.totalorder %v4481_v48, %v4077_v19  ;;  %vm323_vm7 = vcmp.eq.s32.totalorder %v4486_v49, %v4077_v19 }
  0xa8   :  { %3235 = vmatprep.subr.msk.mxu0 %vm370_vm8, %v3960_v16  ;;  %3267 = vmatprep.subr.msk.mxu1 %vm372_vm9, %v3960_v16  ;;  %vm306_vm8 = vcmp.eq.s32.totalorder %v4463_v46, %v4092_v20  ;;  %vm308_vm9 = vcmp.eq.s32.totalorder %v4468_v47, %v4092_v20 }
  0xab   :  { %3236 = vmatpush1.xpose.msk.msra.mxu0 %vm369_vm10, %v3960_v16  ;;  %3268 = vmatpush1.xpose.msk.msra.mxu1 %vm371_vm11, %v3960_v16  ;;  %vm305_vm10 = vcmp.eq.s32.totalorder %v4481_v48, %v4092_v20  ;;  %vm307_vm11 = vcmp.eq.s32.totalorder %v4486_v49, %v4092_v20 }
  0xac   :  { %3237 = vmatprep.subr.msk.mxu0 %vm354_vm12, %v3960_v16  ;;  %3269 = vmatprep.subr.msk.mxu1 %vm356_vm13, %v3960_v16  ;;  %vm290_vm12 = vcmp.eq.s32.totalorder %v4463_v46, %v4107_v21  ;;  %vm292_vm13 = vcmp.eq.s32.totalorder %v4468_v47, %v4107_v21 }
  0xaf   :  { %3238 = vmatpush1.xpose.msk.msra.mxu0 %vm353_vm14, %v3960_v16  ;;  %3270 = vmatpush1.xpose.msk.msra.mxu1 %vm355_vm15, %v3960_v16  ;;  %vm289_vm14 = vcmp.eq.s32.totalorder %v4481_v48, %v4107_v21  ;;  %vm291_vm15 = vcmp.eq.s32.totalorder %v4486_v49, %v4107_v21 }
  0xb0   :  { %3239 = vmatprep.subr.msk.mxu0 %vm338_vm0, %v3960_v16  ;;  %3271 = vmatprep.subr.msk.mxu1 %vm340_vm1, %v3960_v16  ;;  %vm274_vm0 = vcmp.eq.s32.totalorder %v4463_v46, %v4122_v22  ;;  %vm276_vm1 = vcmp.eq.s32.totalorder %v4468_v47, %v4122_v22 }
  0xb3   :  { %3240 = vmatpush1.xpose.msk.msra.mxu0 %vm337_vm2, %v3960_v16  ;;  %3272 = vmatpush1.xpose.msk.msra.mxu1 %vm339_vm3, %v3960_v16  ;;  %vm273_vm2 = vcmp.eq.s32.totalorder %v4481_v48, %v4122_v22  ;;  %vm275_vm3 = vcmp.eq.s32.totalorder %v4486_v49, %v4122_v22 }
  0xb4   :  { %3241 = vmatprep.subr.msk.mxu0 %vm322_vm4, %v3960_v16  ;;  %3273 = vmatprep.subr.msk.mxu1 %vm324_vm5, %v3960_v16  ;;  %vm258_vm4 = vcmp.eq.s32.totalorder %v4463_v46, %v4137_v23  ;;  %vm260_vm5 = vcmp.eq.s32.totalorder %v4468_v47, %v4137_v23 }
  0xb7   :  { %3242 = vmatpush1.xpose.msk.msra.mxu0 %vm321_vm6, %v3960_v16  ;;  %3274 = vmatpush1.xpose.msk.msra.mxu1 %vm323_vm7, %v3960_v16  ;;  %vm257_vm6 = vcmp.eq.s32.totalorder %v4481_v48, %v4137_v23  ;;  %vm259_vm7 = vcmp.eq.s32.totalorder %v4486_v49, %v4137_v23 }
  0xb8   :  { %3243 = vmatprep.subr.msk.mxu0 %vm306_vm8, %v3960_v16  ;;  %3275 = vmatprep.subr.msk.mxu1 %vm308_vm9, %v3960_v16  ;;  %vm242_vm8 = vcmp.eq.s32.totalorder %v4463_v46, %v4152_v24  ;;  %vm244_vm9 = vcmp.eq.s32.totalorder %v4468_v47, %v4152_v24 }
  0xbb   :  { %3244 = vmatpush1.xpose.msk.msra.mxu0 %vm305_vm10, %v3960_v16  ;;  %3276 = vmatpush1.xpose.msk.msra.mxu1 %vm307_vm11, %v3960_v16  ;;  %vm241_vm10 = vcmp.eq.s32.totalorder %v4481_v48, %v4152_v24  ;;  %vm243_vm11 = vcmp.eq.s32.totalorder %v4486_v49, %v4152_v24 }
  0xbc   :  { %3245 = vmatprep.subr.msk.mxu0 %vm290_vm12, %v3960_v16  ;;  %3277 = vmatprep.subr.msk.mxu1 %vm292_vm13, %v3960_v16  ;;  %vm226_vm12 = vcmp.eq.s32.totalorder %v4463_v46, %v4167_v25  ;;  %vm228_vm13 = vcmp.eq.s32.totalorder %v4468_v47, %v4167_v25 }
  0xbf   :  { %3246 = vmatpush1.xpose.msk.msra.mxu0 %vm289_vm14, %v3960_v16  ;;  %3278 = vmatpush1.xpose.msk.msra.mxu1 %vm291_vm15, %v3960_v16  ;;  %vm225_vm14 = vcmp.eq.s32.totalorder %v4481_v48, %v4167_v25  ;;  %vm227_vm15 = vcmp.eq.s32.totalorder %v4486_v49, %v4167_v25 }
  0xc0   :  { %3247 = vmatprep.subr.msk.mxu0 %vm274_vm0, %v3960_v16  ;;  %3279 = vmatprep.subr.msk.mxu1 %vm276_vm1, %v3960_v16  ;;  %vm210_vm0 = vcmp.eq.s32.totalorder %v4463_v46, %v4182_v26  ;;  %vm212_vm1 = vcmp.eq.s32.totalorder %v4468_v47, %v4182_v26 }
  0xc3   :  { %3248 = vmatpush1.xpose.msk.msra.mxu0 %vm273_vm2, %v3960_v16  ;;  %3280 = vmatpush1.xpose.msk.msra.mxu1 %vm275_vm3, %v3960_v16  ;;  %vm209_vm2 = vcmp.eq.s32.totalorder %v4481_v48, %v4182_v26  ;;  %vm211_vm3 = vcmp.eq.s32.totalorder %v4486_v49, %v4182_v26 }
  0xc4   :  { %3249 = vmatprep.subr.msk.mxu0 %vm258_vm4, %v3960_v16  ;;  %3281 = vmatprep.subr.msk.mxu1 %vm260_vm5, %v3960_v16  ;;  %vm194_vm4 = vcmp.eq.s32.totalorder %v4463_v46, %v4197_v27  ;;  %vm196_vm5 = vcmp.eq.s32.totalorder %v4468_v47, %v4197_v27 }
  0xc7   :  { %3250 = vmatpush1.xpose.msk.msra.mxu0 %vm257_vm6, %v3960_v16  ;;  %3282 = vmatpush1.xpose.msk.msra.mxu1 %vm259_vm7, %v3960_v16  ;;  %vm193_vm6 = vcmp.eq.s32.totalorder %v4481_v48, %v4197_v27  ;;  %vm195_vm7 = vcmp.eq.s32.totalorder %v4486_v49, %v4197_v27 }
  0xc8   :  { %3251 = vmatprep.subr.msk.mxu0 %vm242_vm8, %v3960_v16  ;;  %3283 = vmatprep.subr.msk.mxu1 %vm244_vm9, %v3960_v16  ;;  %vm178_vm8 = vcmp.eq.s32.totalorder %v4463_v46, %v4212_v28  ;;  %vm180_vm9 = vcmp.eq.s32.totalorder %v4468_v47, %v4212_v28 }
  0xcb   :  { %3252 = vmatpush1.xpose.msk.msra.mxu0 %vm241_vm10, %v3960_v16  ;;  %3284 = vmatpush1.xpose.msk.msra.mxu1 %vm243_vm11, %v3960_v16  ;;  %vm177_vm10 = vcmp.eq.s32.totalorder %v4481_v48, %v4212_v28  ;;  %vm179_vm11 = vcmp.eq.s32.totalorder %v4486_v49, %v4212_v28 }
  0xcc   :  { %3253 = vmatprep.subr.msk.mxu0 %vm226_vm12, %v3960_v16  ;;  %3285 = vmatprep.subr.msk.mxu1 %vm228_vm13, %v3960_v16  ;;  %vm162_vm12 = vcmp.eq.s32.totalorder %v4463_v46, %v3983_v1  ;;  %vm164_vm13 = vcmp.eq.s32.totalorder %v4468_v47, %v3983_v1 }
  0xcf   :  { %3254 = vmatpush1.xpose.msk.msra.mxu0 %vm225_vm14, %v3960_v16  ;;  %3286 = vmatpush1.xpose.msk.msra.mxu1 %vm227_vm15, %v3960_v16  ;;  %vm161_vm14 = vcmp.eq.s32.totalorder %v4481_v48, %v3983_v1  ;;  %vm163_vm15 = vcmp.eq.s32.totalorder %v4486_v49, %v3983_v1 }
  0xd0   :  { %3255 = vmatprep.subr.msk.mxu0 %vm210_vm0, %v3960_v16  ;;  %3287 = vmatprep.subr.msk.mxu1 %vm212_vm1, %v3960_v16  ;;  %vm406_vm0 = vcmp.eq.s32.totalorder %v4273_v40, %v3990_v6  ;;  %vm408_vm1 = vcmp.eq.s32.totalorder %v4276_v41, %v3990_v6 }
  0xd3   :  { %3256 = vmatpush1.xpose.msk.msra.mxu0 %vm209_vm2, %v3960_v16  ;;  %3288 = vmatpush1.xpose.msk.msra.mxu1 %vm211_vm3, %v3960_v16  ;;  %vm405_vm2 = vcmp.eq.s32.totalorder %v4283_v42, %v3990_v6  ;;  %vm407_vm3 = vcmp.eq.s32.totalorder %v4286_v43, %v3990_v6  ;;  %v3876_v6 = vld [vmem:[#allocation5 + $0x8] sm:$0xff] }
  0xd4   :  { %3257 = vmatprep.subr.msk.mxu0 %vm194_vm4, %v3960_v16  ;;  %3289 = vmatprep.subr.msk.mxu1 %vm196_vm5, %v3960_v16  ;;  %vm390_vm4 = vcmp.eq.s32.totalorder %v4273_v40, %v3995_v8  ;;  %vm392_vm5 = vcmp.eq.s32.totalorder %v4276_v41, %v3995_v8 }
  0xd7   :  { %3258 = vmatpush1.xpose.msk.msra.mxu0 %vm193_vm6, %v3960_v16  ;;  %3290 = vmatpush1.xpose.msk.msra.mxu1 %vm195_vm7, %v3960_v16  ;;  %vm389_vm6 = vcmp.eq.s32.totalorder %v4283_v42, %v3995_v8  ;;  %vm391_vm7 = vcmp.eq.s32.totalorder %v4286_v43, %v3995_v8  ;;  %v4927_v8 = vadd.s32 128, %v4062_v18 }
  0xd8   :  { %3259 = vmatprep.subr.msk.mxu0 %vm178_vm8, %v3960_v16  ;;  %3291 = vmatprep.subr.msk.mxu1 %vm180_vm9, %v3960_v16  ;;  %vm374_vm8 = vcmp.eq.s32.totalorder %v4273_v40, %v4018_v15  ;;  %vm376_vm9 = vcmp.eq.s32.totalorder %v4276_v41, %v4018_v15 }
  0xdb   :  { %3260 = vmatpush1.xpose.msk.msra.mxu0 %vm177_vm10, %v3960_v16  ;;  %3292 = vmatpush1.xpose.msk.msra.mxu1 %vm179_vm11, %v3960_v16  ;;  %vm373_vm10 = vcmp.eq.s32.totalorder %v4283_v42, %v4018_v15  ;;  %vm375_vm11 = vcmp.eq.s32.totalorder %v4286_v43, %v4018_v15  ;;  %v4972_v15 = vadd.s32 128, %v4107_v21 }
  0xdc   :  { %3261 = vmatprep.subr.msk.mxu0 %vm162_vm12, %v3960_v16  ;;  %3293 = vmatprep.subr.msk.mxu1 %vm164_vm13, %v3960_v16  ;;  %vm358_vm12 = vcmp.eq.s32.totalorder %v4273_v40, %v4047_v17  ;;  %vm360_vm13 = vcmp.eq.s32.totalorder %v4276_v41, %v4047_v17 }
  0xdf   :  { %3262 = vmatpush1.xpose.msk.msra.mxu0 %vm161_vm14, %v3960_v16  ;;  %3294 = vmatpush1.xpose.msk.msra.mxu1 %vm163_vm15, %v3960_v16  ;;  %vm357_vm14 = vcmp.eq.s32.totalorder %v4283_v42, %v4047_v17  ;;  %vm359_vm15 = vcmp.eq.s32.totalorder %v4286_v43, %v4047_v17  ;;  %v4987_v17 = vadd.s32 128, %v4122_v22 }
  0xe0   :  { %3295 = vmatprep.subr.msk.mxu0 %vm406_vm0, %v3960_v16  ;;  %3327 = vmatprep.subr.msk.mxu1 %vm408_vm1, %v3960_v16  ;;  %vm342_vm0 = vcmp.eq.s32.totalorder %v4273_v40, %v4062_v18  ;;  %vm344_vm1 = vcmp.eq.s32.totalorder %v4276_v41, %v4062_v18 }
  0xe2   :  { %1267 = vmatmul.mubr.f32.vlgmr.msra.gmra.mxu0 %v64_v54  ;;  %1337 = vmatmul.mubr.f32.vlgmr.msra.gmra.mxu1 %v66_v55  ;;  %v3891_v54 = vld [vmem:[#allocation5 + $0x70] sm:$0xff] }
  0xe3   :  { %3296 = vmatpush1.xpose.msk.msra.mxu0 %vm405_vm2, %v3960_v16  ;;  %3328 = vmatpush1.xpose.msk.msra.mxu1 %vm407_vm3, %v3960_v16  ;;  %vm341_vm2 = vcmp.eq.s32.totalorder %v4283_v42, %v4062_v18  ;;  %vm343_vm3 = vcmp.eq.s32.totalorder %v4286_v43, %v4062_v18  ;;  %v5002_v18 = vadd.s32 128, %v4137_v23 }
  0xe4   :  { %3297 = vmatprep.subr.msk.mxu0 %vm390_vm4, %v3960_v16  ;;  %3329 = vmatprep.subr.msk.mxu1 %vm392_vm5, %v3960_v16  ;;  %vm326_vm4 = vcmp.eq.s32.totalorder %v4273_v40, %v4077_v19  ;;  %vm328_vm5 = vcmp.eq.s32.totalorder %v4276_v41, %v4077_v19 }
  0xe5   :  { %1406 = vmatprep.mubr.f32.mxu0 %v69_v56  ;;  %1476 = vmatprep.mubr.f32.mxu1 %v71_v57 }
  0xe7   :  { %3298 = vmatpush1.xpose.msk.msra.mxu0 %vm389_vm6, %v3960_v16  ;;  %3330 = vmatpush1.xpose.msk.msra.mxu1 %vm391_vm7, %v3960_v16  ;;  %vm325_vm6 = vcmp.eq.s32.totalorder %v4283_v42, %v4077_v19  ;;  %vm327_vm7 = vcmp.eq.s32.totalorder %v4286_v43, %v4077_v19  ;;  %v5017_v19 = vadd.s32 128, %v4152_v24 }
  0xe8   :  { %3299 = vmatprep.subr.msk.mxu0 %vm374_vm8, %v3960_v16  ;;  %3331 = vmatprep.subr.msk.mxu1 %vm376_vm9, %v3960_v16  ;;  %vm310_vm8 = vcmp.eq.s32.totalorder %v4273_v40, %v4092_v20  ;;  %vm312_vm9 = vcmp.eq.s32.totalorder %v4276_v41, %v4092_v20 }
  0xeb   :  { %3300 = vmatpush1.xpose.msk.msra.mxu0 %vm373_vm10, %v3960_v16  ;;  %3332 = vmatpush1.xpose.msk.msra.mxu1 %vm375_vm11, %v3960_v16  ;;  %vm309_vm10 = vcmp.eq.s32.totalorder %v4283_v42, %v4092_v20  ;;  %vm311_vm11 = vcmp.eq.s32.totalorder %v4286_v43, %v4092_v20  ;;  %v5032_v20 = vadd.s32 128, %v4167_v25 }
  0xec   :  { %3301 = vmatprep.subr.msk.mxu0 %vm358_vm12, %v3960_v16  ;;  %3333 = vmatprep.subr.msk.mxu1 %vm360_vm13, %v3960_v16  ;;  %vm294_vm12 = vcmp.eq.s32.totalorder %v4273_v40, %v4107_v21  ;;  %vm296_vm13 = vcmp.eq.s32.totalorder %v4276_v41, %v4107_v21 }
  0xef   :  { %3302 = vmatpush1.xpose.msk.msra.mxu0 %vm357_vm14, %v3960_v16  ;;  %3334 = vmatpush1.xpose.msk.msra.mxu1 %vm359_vm15, %v3960_v16  ;;  %vm293_vm14 = vcmp.eq.s32.totalorder %v4283_v42, %v4107_v21  ;;  %vm295_vm15 = vcmp.eq.s32.totalorder %v4286_v43, %v4107_v21  ;;  %v5047_v21 = vadd.s32 128, %v4182_v26 }
  0xf0   :  { %3303 = vmatprep.subr.msk.mxu0 %vm342_vm0, %v3960_v16  ;;  %3335 = vmatprep.subr.msk.mxu1 %vm344_vm1, %v3960_v16  ;;  %vm278_vm0 = vcmp.eq.s32.totalorder %v4273_v40, %v4122_v22  ;;  %vm280_vm1 = vcmp.eq.s32.totalorder %v4276_v41, %v4122_v22 }
  0xf3   :  { %3304 = vmatpush1.xpose.msk.msra.mxu0 %vm341_vm2, %v3960_v16  ;;  %3336 = vmatpush1.xpose.msk.msra.mxu1 %vm343_vm3, %v3960_v16  ;;  %vm277_vm2 = vcmp.eq.s32.totalorder %v4283_v42, %v4122_v22  ;;  %vm279_vm3 = vcmp.eq.s32.totalorder %v4286_v43, %v4122_v22  ;;  %v5062_v22 = vadd.s32 128, %v4197_v27 }
  0xf4   :  { %3305 = vmatprep.subr.msk.mxu0 %vm326_vm4, %v3960_v16  ;;  %3337 = vmatprep.subr.msk.mxu1 %vm328_vm5, %v3960_v16  ;;  %vm262_vm4 = vcmp.eq.s32.totalorder %v4273_v40, %v4137_v23  ;;  %vm264_vm5 = vcmp.eq.s32.totalorder %v4276_v41, %v4137_v23 }
  0xf7   :  { %3306 = vmatpush1.xpose.msk.msra.mxu0 %vm325_vm6, %v3960_v16  ;;  %3338 = vmatpush1.xpose.msk.msra.mxu1 %vm327_vm7, %v3960_v16  ;;  %vm261_vm6 = vcmp.eq.s32.totalorder %v4283_v42, %v4137_v23  ;;  %vm263_vm7 = vcmp.eq.s32.totalorder %v4286_v43, %v4137_v23  ;;  %v5077_v23 = vadd.s32 128, %v4212_v28 }
  0xf8   :  { %3307 = vmatprep.subr.msk.mxu0 %vm310_vm8, %v3960_v16  ;;  %3339 = vmatprep.subr.msk.mxu1 %vm312_vm9, %v3960_v16  ;;  %vm246_vm8 = vcmp.eq.s32.totalorder %v4273_v40, %v4152_v24  ;;  %vm248_vm9 = vcmp.eq.s32.totalorder %v4276_v41, %v4152_v24 }
  0xfb   :  { %3308 = vmatpush1.xpose.msk.msra.mxu0 %vm309_vm10, %v3960_v16  ;;  %3340 = vmatpush1.xpose.msk.msra.mxu1 %vm311_vm11, %v3960_v16  ;;  %vm245_vm10 = vcmp.eq.s32.totalorder %v4283_v42, %v4152_v24  ;;  %vm247_vm11 = vcmp.eq.s32.totalorder %v4286_v43, %v4152_v24  ;;  %v5092_v24 = vadd.s32 128, %v3983_v1 }
  0xfc   :  { %3309 = vmatprep.subr.msk.mxu0 %vm294_vm12, %v3960_v16  ;;  %3341 = vmatprep.subr.msk.mxu1 %vm296_vm13, %v3960_v16  ;;  %vm230_vm12 = vcmp.eq.s32.totalorder %v4273_v40, %v4167_v25  ;;  %vm232_vm13 = vcmp.eq.s32.totalorder %v4276_v41, %v4167_v25 }
  0xff   :  { %3310 = vmatpush1.xpose.msk.msra.mxu0 %vm293_vm14, %v3960_v16  ;;  %3342 = vmatpush1.xpose.msk.msra.mxu1 %vm295_vm15, %v3960_v16  ;;  %vm229_vm14 = vcmp.eq.s32.totalorder %v4283_v42, %v4167_v25  ;;  %vm231_vm15 = vcmp.eq.s32.totalorder %v4286_v43, %v4167_v25 }
 0x100   :  { %3311 = vmatprep.subr.msk.mxu0 %vm278_vm0, %v3960_v16  ;;  %3343 = vmatprep.subr.msk.mxu1 %vm280_vm1, %v3960_v16  ;;  %vm214_vm0 = vcmp.eq.s32.totalorder %v4273_v40, %v4182_v26  ;;  %vm216_vm1 = vcmp.eq.s32.totalorder %v4276_v41, %v4182_v26 }
 0x103   :  { %3312 = vmatpush1.xpose.msk.msra.mxu0 %vm277_vm2, %v3960_v16  ;;  %3344 = vmatpush1.xpose.msk.msra.mxu1 %vm279_vm3, %v3960_v16  ;;  %vm213_vm2 = vcmp.eq.s32.totalorder %v4283_v42, %v4182_v26  ;;  %vm215_vm3 = vcmp.eq.s32.totalorder %v4286_v43, %v4182_v26 }
 0x104   :  { %3313 = vmatprep.subr.msk.mxu0 %vm262_vm4, %v3960_v16  ;;  %3345 = vmatprep.subr.msk.mxu1 %vm264_vm5, %v3960_v16  ;;  %vm198_vm4 = vcmp.eq.s32.totalorder %v4273_v40, %v4197_v27  ;;  %vm200_vm5 = vcmp.eq.s32.totalorder %v4276_v41, %v4197_v27 }
 0x107   :  { %3314 = vmatpush1.xpose.msk.msra.mxu0 %vm261_vm6, %v3960_v16  ;;  %3346 = vmatpush1.xpose.msk.msra.mxu1 %vm263_vm7, %v3960_v16  ;;  %vm197_vm6 = vcmp.eq.s32.totalorder %v4283_v42, %v4197_v27  ;;  %vm199_vm7 = vcmp.eq.s32.totalorder %v4286_v43, %v4197_v27 }
 0x108   :  { %3315 = vmatprep.subr.msk.mxu0 %vm246_vm8, %v3960_v16  ;;  %3347 = vmatprep.subr.msk.mxu1 %vm248_vm9, %v3960_v16  ;;  %vm182_vm8 = vcmp.eq.s32.totalorder %v4273_v40, %v4212_v28  ;;  %vm184_vm9 = vcmp.eq.s32.totalorder %v4276_v41, %v4212_v28 }
 0x10b   :  { %3316 = vmatpush1.xpose.msk.msra.mxu0 %vm245_vm10, %v3960_v16  ;;  %3348 = vmatpush1.xpose.msk.msra.mxu1 %vm247_vm11, %v3960_v16  ;;  %vm181_vm10 = vcmp.eq.s32.totalorder %v4283_v42, %v4212_v28  ;;  %vm183_vm11 = vcmp.eq.s32.totalorder %v4286_v43, %v4212_v28  ;;  %v3880_v28 = vld [vmem:[#allocation5 + $0x28] sm:$0xff] }
 0x10c   :  { %3317 = vmatprep.subr.msk.mxu0 %vm230_vm12, %v3960_v16  ;;  %3349 = vmatprep.subr.msk.mxu1 %vm232_vm13, %v3960_v16  ;;  %vm166_vm12 = vcmp.eq.s32.totalorder %v4273_v40, %v3983_v1  ;;  %vm168_vm13 = vcmp.eq.s32.totalorder %v4276_v41, %v3983_v1 }
 0x10f   :  { %3318 = vmatpush1.xpose.msk.msra.mxu0 %vm229_vm14, %v3960_v16  ;;  %3350 = vmatpush1.xpose.msk.msra.mxu1 %vm231_vm15, %v3960_v16  ;;  %vm165_vm14 = vcmp.eq.s32.totalorder %v4283_v42, %v3983_v1  ;;  %vm167_vm15 = vcmp.eq.s32.totalorder %v4286_v43, %v3983_v1 }
 0x110   :  { %3319 = vmatprep.subr.msk.mxu0 %vm214_vm0, %v3960_v16  ;;  %3351 = vmatprep.subr.msk.mxu1 %vm216_vm1, %v3960_v16  ;;  %vm1741_vm0 = vcmp.eq.s32.totalorder %v4000_v10, %v4865_v58  ;;  %vm1743_vm1 = vcmp.eq.s32.totalorder %v4005_v11, %v4865_v58 }
 0x113   :  { %3320 = vmatpush1.xpose.msk.msra.mxu0 %vm213_vm2, %v3960_v16  ;;  %3352 = vmatpush1.xpose.msk.msra.mxu1 %vm215_vm3, %v3960_v16  ;;  %vm1740_vm2 = vcmp.eq.s32.totalorder %v4010_v12, %v4865_v58  ;;  %vm1742_vm3 = vcmp.eq.s32.totalorder %v4015_v13, %v4865_v58 }
 0x114   :  { %3321 = vmatprep.subr.msk.mxu0 %vm198_vm4, %v3960_v16  ;;  %3353 = vmatprep.subr.msk.mxu1 %vm200_vm5, %v3960_v16  ;;  %vm1725_vm4 = vcmp.eq.s32.totalorder %v4000_v10, %v4880_v59  ;;  %vm1727_vm5 = vcmp.eq.s32.totalorder %v4005_v11, %v4880_v59 }
 0x117   :  { %3322 = vmatpush1.xpose.msk.msra.mxu0 %vm197_vm6, %v3960_v16  ;;  %3354 = vmatpush1.xpose.msk.msra.mxu1 %vm199_vm7, %v3960_v16  ;;  %vm1724_vm6 = vcmp.eq.s32.totalorder %v4010_v12, %v4880_v59  ;;  %vm1726_vm7 = vcmp.eq.s32.totalorder %v4015_v13, %v4880_v59 }
 0x118   :  { %3323 = vmatprep.subr.msk.mxu0 %vm182_vm8, %v3960_v16  ;;  %3355 = vmatprep.subr.msk.mxu1 %vm184_vm9, %v3960_v16  ;;  %vm1709_vm8 = vcmp.eq.s32.totalorder %v4000_v10, %v4895_v62  ;;  %vm1711_vm9 = vcmp.eq.s32.totalorder %v4005_v11, %v4895_v62 }
 0x11b   :  { %3324 = vmatpush1.xpose.msk.msra.mxu0 %vm181_vm10, %v3960_v16  ;;  %3356 = vmatpush1.xpose.msk.msra.mxu1 %vm183_vm11, %v3960_v16  ;;  %vm1708_vm10 = vcmp.eq.s32.totalorder %v4010_v12, %v4895_v62  ;;  %vm1710_vm11 = vcmp.eq.s32.totalorder %v4015_v13, %v4895_v62 }
 0x11c   :  { %3325 = vmatprep.subr.msk.mxu0 %vm166_vm12, %v3960_v16  ;;  %3357 = vmatprep.subr.msk.mxu1 %vm168_vm13, %v3960_v16  ;;  %vm1693_vm12 = vcmp.eq.s32.totalorder %v4000_v10, %v4912_v5  ;;  %vm1695_vm13 = vcmp.eq.s32.totalorder %v4005_v11, %v4912_v5 }
 0x11f   :  { %3326 = vmatpush1.xpose.msk.msra.mxu0 %vm165_vm14, %v3960_v16  ;;  %3358 = vmatpush1.xpose.msk.msra.mxu1 %vm167_vm15, %v3960_v16  ;;  %vm1692_vm14 = vcmp.eq.s32.totalorder %v4010_v12, %v4912_v5  ;;  %vm1694_vm15 = vcmp.eq.s32.totalorder %v4015_v13, %v4912_v5 }
 0x120   :  { %3615 = vmatprep.subr.msk.mxu0 %vm1741_vm0, %v3960_v16  ;;  %3647 = vmatprep.subr.msk.mxu1 %vm1743_vm1, %v3960_v16  ;;  %vm1677_vm0 = vcmp.eq.s32.totalorder %v4000_v10, %v4927_v8  ;;  %vm1679_vm1 = vcmp.eq.s32.totalorder %v4005_v11, %v4927_v8 }
 0x122   :  { %v988_v63 = vpop.f32.mrf.mxu0  ;;  %1407 = vmatmul.mubr.f32.vlgmr.msra.gmra.mxu0 %v68_v60  ;;  %v1058_v0 = vpop.f32.mrf.mxu1  ;;  %1477 = vmatmul.mubr.f32.vlgmr.msra.gmra.mxu1 %v70_v61 }
 0x123   :  { %v4897_v2 = vadd.f32 %v1058_v0, %v988_v63  ;;  %3616 = vmatpush1.xpose.msk.msra.mxu0 %vm1740_vm2, %v3960_v16  ;;  %3648 = vmatpush1.xpose.msk.msra.mxu1 %vm1742_vm3, %v3960_v16  ;;  %vm1676_vm2 = vcmp.eq.s32.totalorder %v4010_v12, %v4927_v8  ;;  %vm1678_vm3 = vcmp.eq.s32.totalorder %v4015_v13, %v4927_v8 }
 0x124   :  { %v990_v3 = vpop.f32.mrf.mxu0  ;;  %v1060_v4 = vpop.f32.mrf.mxu1  ;;  %3617 = vmatprep.subr.msk.mxu0 %vm1725_vm4, %v3960_v16  ;;  %3649 = vmatprep.subr.msk.mxu1 %vm1727_vm5, %v3960_v16  ;;  %vm1661_vm4 = vcmp.eq.s32.totalorder %v4000_v10, %v4942_v9  ;;  %vm1663_vm5 = vcmp.eq.s32.totalorder %v4005_v11, %v4942_v9 }
 0x125   :  { %2333 = vmatprep.mubr.f32.mxu0 %v3876_v6  ;;  %2403 = vmatprep.mubr.f32.mxu1 %v3877_v7 }
 0x127   :  { %3618 = vmatpush1.xpose.msk.msra.mxu0 %vm1724_vm6, %v3960_v16  ;;  %3650 = vmatpush1.xpose.msk.msra.mxu1 %vm1726_vm7, %v3960_v16  ;;  %vm1660_vm6 = vcmp.eq.s32.totalorder %v4010_v12, %v4942_v9  ;;  %vm1662_vm7 = vcmp.eq.s32.totalorder %v4015_v13, %v4942_v9 }
 0x128   :  { %3619 = vmatprep.subr.msk.mxu0 %vm1709_vm8, %v3960_v16  ;;  %3651 = vmatprep.subr.msk.mxu1 %vm1711_vm9, %v3960_v16  ;;  %vm1645_vm8 = vcmp.eq.s32.totalorder %v4000_v10, %v4957_v14  ;;  %vm1647_vm9 = vcmp.eq.s32.totalorder %v4005_v11, %v4957_v14 }
 0x12b   :  { %3620 = vmatpush1.xpose.msk.msra.mxu0 %vm1708_vm10, %v3960_v16  ;;  %3652 = vmatpush1.xpose.msk.msra.mxu1 %vm1710_vm11, %v3960_v16  ;;  %vm1644_vm10 = vcmp.eq.s32.totalorder %v4010_v12, %v4957_v14  ;;  %vm1646_vm11 = vcmp.eq.s32.totalorder %v4015_v13, %v4957_v14 }
 0x12c   :  { %3621 = vmatprep.subr.msk.mxu0 %vm1693_vm12, %v3960_v16  ;;  %3653 = vmatprep.subr.msk.mxu1 %vm1695_vm13, %v3960_v16  ;;  %vm1629_vm12 = vcmp.eq.s32.totalorder %v4000_v10, %v4972_v15  ;;  %vm1631_vm13 = vcmp.eq.s32.totalorder %v4005_v11, %v4972_v15 }
 0x12f   :  { %3622 = vmatpush1.xpose.msk.msra.mxu0 %vm1692_vm14, %v3960_v16  ;;  %3654 = vmatpush1.xpose.msk.msra.mxu1 %vm1694_vm15, %v3960_v16  ;;  %vm1628_vm14 = vcmp.eq.s32.totalorder %v4010_v12, %v4972_v15  ;;  %vm1630_vm15 = vcmp.eq.s32.totalorder %v4015_v13, %v4972_v15 }
 0x130   :  { %3623 = vmatprep.subr.msk.mxu0 %vm1677_vm0, %v3960_v16  ;;  %3655 = vmatprep.subr.msk.mxu1 %vm1679_vm1, %v3960_v16  ;;  %vm1613_vm0 = vcmp.eq.s32.totalorder %v4000_v10, %v4987_v17  ;;  %vm1615_vm1 = vcmp.eq.s32.totalorder %v4005_v11, %v4987_v17 }
 0x133   :  { %3624 = vmatpush1.xpose.msk.msra.mxu0 %vm1676_vm2, %v3960_v16  ;;  %3656 = vmatpush1.xpose.msk.msra.mxu1 %vm1678_vm3, %v3960_v16  ;;  %vm1612_vm2 = vcmp.eq.s32.totalorder %v4010_v12, %v4987_v17  ;;  %vm1614_vm3 = vcmp.eq.s32.totalorder %v4015_v13, %v4987_v17 }
 0x134   :  { %3625 = vmatprep.subr.msk.mxu0 %vm1661_vm4, %v3960_v16  ;;  %3657 = vmatprep.subr.msk.mxu1 %vm1663_vm5, %v3960_v16  ;;  %vm1597_vm4 = vcmp.eq.s32.totalorder %v4000_v10, %v5002_v18  ;;  %vm1599_vm5 = vcmp.eq.s32.totalorder %v4005_v11, %v5002_v18 }
 0x137   :  { %3626 = vmatpush1.xpose.msk.msra.mxu0 %vm1660_vm6, %v3960_v16  ;;  %3658 = vmatpush1.xpose.msk.msra.mxu1 %vm1662_vm7, %v3960_v16  ;;  %vm1596_vm6 = vcmp.eq.s32.totalorder %v4010_v12, %v5002_v18  ;;  %vm1598_vm7 = vcmp.eq.s32.totalorder %v4015_v13, %v5002_v18 }
 0x138   :  { %3627 = vmatprep.subr.msk.mxu0 %vm1645_vm8, %v3960_v16  ;;  %3659 = vmatprep.subr.msk.mxu1 %vm1647_vm9, %v3960_v16  ;;  %vm1581_vm8 = vcmp.eq.s32.totalorder %v4000_v10, %v5017_v19  ;;  %vm1583_vm9 = vcmp.eq.s32.totalorder %v4005_v11, %v5017_v19 }
 0x13b   :  { %3628 = vmatpush1.xpose.msk.msra.mxu0 %vm1644_vm10, %v3960_v16  ;;  %3660 = vmatpush1.xpose.msk.msra.mxu1 %vm1646_vm11, %v3960_v16  ;;  %vm1580_vm10 = vcmp.eq.s32.totalorder %v4010_v12, %v5017_v19  ;;  %vm1582_vm11 = vcmp.eq.s32.totalorder %v4015_v13, %v5017_v19 }
 0x13c   :  { %3629 = vmatprep.subr.msk.mxu0 %vm1629_vm12, %v3960_v16  ;;  %3661 = vmatprep.subr.msk.mxu1 %vm1631_vm13, %v3960_v16  ;;  %vm1565_vm12 = vcmp.eq.s32.totalorder %v4000_v10, %v5032_v20  ;;  %vm1567_vm13 = vcmp.eq.s32.totalorder %v4005_v11, %v5032_v20 }
 0x13f   :  { %3630 = vmatpush1.xpose.msk.msra.mxu0 %vm1628_vm14, %v3960_v16  ;;  %3662 = vmatpush1.xpose.msk.msra.mxu1 %vm1630_vm15, %v3960_v16  ;;  %vm1564_vm14 = vcmp.eq.s32.totalorder %v4010_v12, %v5032_v20  ;;  %vm1566_vm15 = vcmp.eq.s32.totalorder %v4015_v13, %v5032_v20 }
 0x140   :  { %3631 = vmatprep.subr.msk.mxu0 %vm1613_vm0, %v3960_v16  ;;  %3663 = vmatprep.subr.msk.mxu1 %vm1615_vm1, %v3960_v16  ;;  %vm1549_vm0 = vcmp.eq.s32.totalorder %v4000_v10, %v5047_v21  ;;  %vm1551_vm1 = vcmp.eq.s32.totalorder %v4005_v11, %v5047_v21 }
 0x143   :  { %3632 = vmatpush1.xpose.msk.msra.mxu0 %vm1612_vm2, %v3960_v16  ;;  %3664 = vmatpush1.xpose.msk.msra.mxu1 %vm1614_vm3, %v3960_v16  ;;  %vm1548_vm2 = vcmp.eq.s32.totalorder %v4010_v12, %v5047_v21  ;;  %vm1550_vm3 = vcmp.eq.s32.totalorder %v4015_v13, %v5047_v21 }
 0x144   :  { %3633 = vmatprep.subr.msk.mxu0 %vm1597_vm4, %v3960_v16  ;;  %3665 = vmatprep.subr.msk.mxu1 %vm1599_vm5, %v3960_v16  ;;  %vm1533_vm4 = vcmp.eq.s32.totalorder %v4000_v10, %v5062_v22  ;;  %vm1535_vm5 = vcmp.eq.s32.totalorder %v4005_v11, %v5062_v22 }
 0x147   :  { %3634 = vmatpush1.xpose.msk.msra.mxu0 %vm1596_vm6, %v3960_v16  ;;  %3666 = vmatpush1.xpose.msk.msra.mxu1 %vm1598_vm7, %v3960_v16  ;;  %vm1532_vm6 = vcmp.eq.s32.totalorder %v4010_v12, %v5062_v22  ;;  %vm1534_vm7 = vcmp.eq.s32.totalorder %v4015_v13, %v5062_v22 }
 0x148   :  { %3635 = vmatprep.subr.msk.mxu0 %vm1581_vm8, %v3960_v16  ;;  %3667 = vmatprep.subr.msk.mxu1 %vm1583_vm9, %v3960_v16  ;;  %vm1517_vm8 = vcmp.eq.s32.totalorder %v4000_v10, %v5077_v23  ;;  %vm1519_vm9 = vcmp.eq.s32.totalorder %v4005_v11, %v5077_v23 }
 0x14b   :  { %3636 = vmatpush1.xpose.msk.msra.mxu0 %vm1580_vm10, %v3960_v16  ;;  %3668 = vmatpush1.xpose.msk.msra.mxu1 %vm1582_vm11, %v3960_v16  ;;  %vm1516_vm10 = vcmp.eq.s32.totalorder %v4010_v12, %v5077_v23  ;;  %vm1518_vm11 = vcmp.eq.s32.totalorder %v4015_v13, %v5077_v23 }
 0x14c   :  { %3637 = vmatprep.subr.msk.mxu0 %vm1565_vm12, %v3960_v16  ;;  %3669 = vmatprep.subr.msk.mxu1 %vm1567_vm13, %v3960_v16  ;;  %vm1501_vm12 = vcmp.eq.s32.totalorder %v4000_v10, %v5092_v24  ;;  %vm1503_vm13 = vcmp.eq.s32.totalorder %v4005_v11, %v5092_v24  ;;  %v3878_v10 = vld [vmem:[#allocation5] sm:$0xff] }
 0x14f   :  { %3638 = vmatpush1.xpose.msk.msra.mxu0 %vm1564_vm14, %v3960_v16  ;;  %3670 = vmatpush1.xpose.msk.msra.mxu1 %vm1566_vm15, %v3960_v16  ;;  %vm1500_vm14 = vcmp.eq.s32.totalorder %v4010_v12, %v5092_v24  ;;  %vm1502_vm15 = vcmp.eq.s32.totalorder %v4015_v13, %v5092_v24  ;;  %v3879_v12 = vld [vmem:[#allocation5 + $0x10] sm:$0xff] }
 0x150   :  { %3639 = vmatprep.subr.msk.mxu0 %vm1549_vm0, %v3960_v16  ;;  %3671 = vmatprep.subr.msk.mxu1 %vm1551_vm1, %v3960_v16  ;;  %vm1745_vm0 = vcmp.eq.s32.totalorder %v4243_v33, %v4865_v58  ;;  %vm1747_vm1 = vcmp.eq.s32.totalorder %v4246_v34, %v4865_v58 }
 0x153   :  { %3640 = vmatpush1.xpose.msk.msra.mxu0 %vm1548_vm2, %v3960_v16  ;;  %3672 = vmatpush1.xpose.msk.msra.mxu1 %vm1550_vm3, %v3960_v16  ;;  %vm1744_vm2 = vcmp.eq.s32.totalorder %v4251_v35, %v4865_v58  ;;  %vm1746_vm3 = vcmp.eq.s32.totalorder %v4260_v36, %v4865_v58 }
 0x154   :  { %3641 = vmatprep.subr.msk.mxu0 %vm1533_vm4, %v3960_v16  ;;  %3673 = vmatprep.subr.msk.mxu1 %vm1535_vm5, %v3960_v16  ;;  %vm1729_vm4 = vcmp.eq.s32.totalorder %v4243_v33, %v4880_v59  ;;  %vm1731_vm5 = vcmp.eq.s32.totalorder %v4246_v34, %v4880_v59 }
 0x157   :  { %3642 = vmatpush1.xpose.msk.msra.mxu0 %vm1532_vm6, %v3960_v16  ;;  %3674 = vmatpush1.xpose.msk.msra.mxu1 %vm1534_vm7, %v3960_v16  ;;  %vm1728_vm6 = vcmp.eq.s32.totalorder %v4251_v35, %v4880_v59  ;;  %vm1730_vm7 = vcmp.eq.s32.totalorder %v4260_v36, %v4880_v59 }
 0x158   :  { %3643 = vmatprep.subr.msk.mxu0 %vm1517_vm8, %v3960_v16  ;;  %3675 = vmatprep.subr.msk.mxu1 %vm1519_vm9, %v3960_v16  ;;  %vm1713_vm8 = vcmp.eq.s32.totalorder %v4243_v33, %v4895_v62  ;;  %vm1715_vm9 = vcmp.eq.s32.totalorder %v4246_v34, %v4895_v62 }
 0x15b   :  { %3644 = vmatpush1.xpose.msk.msra.mxu0 %vm1516_vm10, %v3960_v16  ;;  %3676 = vmatpush1.xpose.msk.msra.mxu1 %vm1518_vm11, %v3960_v16  ;;  %vm1712_vm10 = vcmp.eq.s32.totalorder %v4251_v35, %v4895_v62  ;;  %vm1714_vm11 = vcmp.eq.s32.totalorder %v4260_v36, %v4895_v62 }
 0x15c   :  { %3645 = vmatprep.subr.msk.mxu0 %vm1501_vm12, %v3960_v16  ;;  %3677 = vmatprep.subr.msk.mxu1 %vm1503_vm13, %v3960_v16  ;;  %vm1697_vm12 = vcmp.eq.s32.totalorder %v4243_v33, %v4912_v5  ;;  %vm1699_vm13 = vcmp.eq.s32.totalorder %v4246_v34, %v4912_v5 }
 0x15f   :  { %3646 = vmatpush1.xpose.msk.msra.mxu0 %vm1500_vm14, %v3960_v16  ;;  %3678 = vmatpush1.xpose.msk.msra.mxu1 %vm1502_vm15, %v3960_v16  ;;  %vm1696_vm14 = vcmp.eq.s32.totalorder %v4251_v35, %v4912_v5  ;;  %vm1698_vm15 = vcmp.eq.s32.totalorder %v4260_v36, %v4912_v5 }
 0x160   :  { %3679 = vmatprep.subr.msk.mxu0 %vm1745_vm0, %v3960_v16  ;;  %3711 = vmatprep.subr.msk.mxu1 %vm1747_vm1, %v3960_v16  ;;  %vm1681_vm0 = vcmp.eq.s32.totalorder %v4243_v33, %v4927_v8  ;;  %vm1683_vm1 = vcmp.eq.s32.totalorder %v4246_v34, %v4927_v8 }
 0x162   :  { %v1128_v1 = vpop.f32.mrf.mxu0  ;;  %2334 = vmatmul.mubr.f32.vlgmr.msra.gmra.mxu0 %v3878_v10  ;;  %v1198_v11 = vpop.f32.mrf.mxu1  ;;  %2404 = vmatmul.mubr.f32.vlgmr.msra.gmra.mxu1 %v3879_v12 }
 0x163   :  { %v1129_v13 = vadd.f32 %v1128_v1, %v4897_v2  ;;  %3680 = vmatpush1.xpose.msk.msra.mxu0 %vm1744_vm2, %v3960_v16  ;;  %3712 = vmatpush1.xpose.msk.msra.mxu1 %vm1746_vm3, %v3960_v16  ;;  %vm1680_vm2 = vcmp.eq.s32.totalorder %v4251_v35, %v4927_v8  ;;  %vm1682_vm3 = vcmp.eq.s32.totalorder %v4260_v36, %v4927_v8 }
 0x164   :  { %v1130_v25 = vpop.f32.mrf.mxu0  ;;  %v1200_v26 = vpop.f32.mrf.mxu1  ;;  %3681 = vmatprep.subr.msk.mxu0 %vm1729_vm4, %v3960_v16  ;;  %3713 = vmatprep.subr.msk.mxu1 %vm1731_vm5, %v3960_v16  ;;  %vm1665_vm4 = vcmp.eq.s32.totalorder %v4243_v33, %v4942_v9  ;;  %vm1667_vm5 = vcmp.eq.s32.totalorder %v4246_v34, %v4942_v9 }
 0x165   :  { %v5139_v27 = vadd.f32 %v1198_v11, %v1129_v13  ;;  %2473 = vmatprep.mubr.f32.mxu0 %v3880_v28  ;;  %2543 = vmatprep.mubr.f32.mxu1 %v3881_v29 }
 0x167   :  { %3682 = vmatpush1.xpose.msk.msra.mxu0 %vm1728_vm6, %v3960_v16  ;;  %3714 = vmatpush1.xpose.msk.msra.mxu1 %vm1730_vm7, %v3960_v16  ;;  %vm1664_vm6 = vcmp.eq.s32.totalorder %v4251_v35, %v4942_v9  ;;  %vm1666_vm7 = vcmp.eq.s32.totalorder %v4260_v36, %v4942_v9 }
 0x168   :  { %3683 = vmatprep.subr.msk.mxu0 %vm1713_vm8, %v3960_v16  ;;  %3715 = vmatprep.subr.msk.mxu1 %vm1715_vm9, %v3960_v16  ;;  %vm1649_vm8 = vcmp.eq.s32.totalorder %v4243_v33, %v4957_v14  ;;  %vm1651_vm9 = vcmp.eq.s32.totalorder %v4246_v34, %v4957_v14 }
 0x16b   :  { %3684 = vmatpush1.xpose.msk.msra.mxu0 %vm1712_vm10, %v3960_v16  ;;  %3716 = vmatpush1.xpose.msk.msra.mxu1 %vm1714_vm11, %v3960_v16  ;;  %vm1648_vm10 = vcmp.eq.s32.totalorder %v4251_v35, %v4957_v14  ;;  %vm1650_vm11 = vcmp.eq.s32.totalorder %v4260_v36, %v4957_v14 }
 0x16c   :  { %3685 = vmatprep.subr.msk.mxu0 %vm1697_vm12, %v3960_v16  ;;  %3717 = vmatprep.subr.msk.mxu1 %vm1699_vm13, %v3960_v16  ;;  %vm1633_vm12 = vcmp.eq.s32.totalorder %v4243_v33, %v4972_v15  ;;  %vm1635_vm13 = vcmp.eq.s32.totalorder %v4246_v34, %v4972_v15 }
 0x16f   :  { %3686 = vmatpush1.xpose.msk.msra.mxu0 %vm1696_vm14, %v3960_v16  ;;  %3718 = vmatpush1.xpose.msk.msra.mxu1 %vm1698_vm15, %v3960_v16  ;;  %vm1632_vm14 = vcmp.eq.s32.totalorder %v4251_v35, %v4972_v15  ;;  %vm1634_vm15 = vcmp.eq.s32.totalorder %v4260_v36, %v4972_v15 }
 0x170   :  { %3687 = vmatprep.subr.msk.mxu0 %vm1681_vm0, %v3960_v16  ;;  %3719 = vmatprep.subr.msk.mxu1 %vm1683_vm1, %v3960_v16  ;;  %vm1617_vm0 = vcmp.eq.s32.totalorder %v4243_v33, %v4987_v17  ;;  %vm1619_vm1 = vcmp.eq.s32.totalorder %v4246_v34, %v4987_v17 }
 0x173   :  { %3688 = vmatpush1.xpose.msk.msra.mxu0 %vm1680_vm2, %v3960_v16  ;;  %3720 = vmatpush1.xpose.msk.msra.mxu1 %vm1682_vm3, %v3960_v16  ;;  %vm1616_vm2 = vcmp.eq.s32.totalorder %v4251_v35, %v4987_v17  ;;  %vm1618_vm3 = vcmp.eq.s32.totalorder %v4260_v36, %v4987_v17 }
 0x174   :  { %3689 = vmatprep.subr.msk.mxu0 %vm1665_vm4, %v3960_v16  ;;  %3721 = vmatprep.subr.msk.mxu1 %vm1667_vm5, %v3960_v16  ;;  %vm1601_vm4 = vcmp.eq.s32.totalorder %v4243_v33, %v5002_v18  ;;  %vm1603_vm5 = vcmp.eq.s32.totalorder %v4246_v34, %v5002_v18 }
 0x177   :  { %3690 = vmatpush1.xpose.msk.msra.mxu0 %vm1664_vm6, %v3960_v16  ;;  %3722 = vmatpush1.xpose.msk.msra.mxu1 %vm1666_vm7, %v3960_v16  ;;  %vm1600_vm6 = vcmp.eq.s32.totalorder %v4251_v35, %v5002_v18  ;;  %vm1602_vm7 = vcmp.eq.s32.totalorder %v4260_v36, %v5002_v18 }
 0x178   :  { %3691 = vmatprep.subr.msk.mxu0 %vm1649_vm8, %v3960_v16  ;;  %3723 = vmatprep.subr.msk.mxu1 %vm1651_vm9, %v3960_v16  ;;  %vm1585_vm8 = vcmp.eq.s32.totalorder %v4243_v33, %v5017_v19  ;;  %vm1587_vm9 = vcmp.eq.s32.totalorder %v4246_v34, %v5017_v19 }
 0x17b   :  { %3692 = vmatpush1.xpose.msk.msra.mxu0 %vm1648_vm10, %v3960_v16  ;;  %3724 = vmatpush1.xpose.msk.msra.mxu1 %vm1650_vm11, %v3960_v16  ;;  %vm1584_vm10 = vcmp.eq.s32.totalorder %v4251_v35, %v5017_v19  ;;  %vm1586_vm11 = vcmp.eq.s32.totalorder %v4260_v36, %v5017_v19 }
 0x17c   :  { %3693 = vmatprep.subr.msk.mxu0 %vm1633_vm12, %v3960_v16  ;;  %3725 = vmatprep.subr.msk.mxu1 %vm1635_vm13, %v3960_v16  ;;  %vm1569_vm12 = vcmp.eq.s32.totalorder %v4243_v33, %v5032_v20  ;;  %vm1571_vm13 = vcmp.eq.s32.totalorder %v4246_v34, %v5032_v20 }
 0x17f   :  { %3694 = vmatpush1.xpose.msk.msra.mxu0 %vm1632_vm14, %v3960_v16  ;;  %3726 = vmatpush1.xpose.msk.msra.mxu1 %vm1634_vm15, %v3960_v16  ;;  %vm1568_vm14 = vcmp.eq.s32.totalorder %v4251_v35, %v5032_v20  ;;  %vm1570_vm15 = vcmp.eq.s32.totalorder %v4260_v36, %v5032_v20 }
 0x180   :  { %3695 = vmatprep.subr.msk.mxu0 %vm1617_vm0, %v3960_v16  ;;  %3727 = vmatprep.subr.msk.mxu1 %vm1619_vm1, %v3960_v16  ;;  %vm1553_vm0 = vcmp.eq.s32.totalorder %v4243_v33, %v5047_v21  ;;  %vm1555_vm1 = vcmp.eq.s32.totalorder %v4246_v34, %v5047_v21 }
 0x183   :  { %3696 = vmatpush1.xpose.msk.msra.mxu0 %vm1616_vm2, %v3960_v16  ;;  %3728 = vmatpush1.xpose.msk.msra.mxu1 %vm1618_vm3, %v3960_v16  ;;  %vm1552_vm2 = vcmp.eq.s32.totalorder %v4251_v35, %v5047_v21  ;;  %vm1554_vm3 = vcmp.eq.s32.totalorder %v4260_v36, %v5047_v21 }
 0x184   :  { %3697 = vmatprep.subr.msk.mxu0 %vm1601_vm4, %v3960_v16  ;;  %3729 = vmatprep.subr.msk.mxu1 %vm1603_vm5, %v3960_v16  ;;  %vm1537_vm4 = vcmp.eq.s32.totalorder %v4243_v33, %v5062_v22  ;;  %vm1539_vm5 = vcmp.eq.s32.totalorder %v4246_v34, %v5062_v22 }
 0x187   :  { %3698 = vmatpush1.xpose.msk.msra.mxu0 %vm1600_vm6, %v3960_v16  ;;  %3730 = vmatpush1.xpose.msk.msra.mxu1 %vm1602_vm7, %v3960_v16  ;;  %vm1536_vm6 = vcmp.eq.s32.totalorder %v4251_v35, %v5062_v22  ;;  %vm1538_vm7 = vcmp.eq.s32.totalorder %v4260_v36, %v5062_v22 }
 0x188   :  { %3699 = vmatprep.subr.msk.mxu0 %vm1585_vm8, %v3960_v16  ;;  %3731 = vmatprep.subr.msk.mxu1 %vm1587_vm9, %v3960_v16  ;;  %vm1521_vm8 = vcmp.eq.s32.totalorder %v4243_v33, %v5077_v23  ;;  %vm1523_vm9 = vcmp.eq.s32.totalorder %v4246_v34, %v5077_v23 }
 0x18b   :  { %3700 = vmatpush1.xpose.msk.msra.mxu0 %vm1584_vm10, %v3960_v16  ;;  %3732 = vmatpush1.xpose.msk.msra.mxu1 %vm1586_vm11, %v3960_v16  ;;  %vm1520_vm10 = vcmp.eq.s32.totalorder %v4251_v35, %v5077_v23  ;;  %vm1522_vm11 = vcmp.eq.s32.totalorder %v4260_v36, %v5077_v23 }
 0x18c   :  { %3701 = vmatprep.subr.msk.mxu0 %vm1569_vm12, %v3960_v16  ;;  %3733 = vmatprep.subr.msk.mxu1 %vm1571_vm13, %v3960_v16  ;;  %vm1505_vm12 = vcmp.eq.s32.totalorder %v4243_v33, %v5092_v24  ;;  %vm1507_vm13 = vcmp.eq.s32.totalorder %v4246_v34, %v5092_v24  ;;  %v3883_v33 = vld [vmem:[#allocation5 + $0x30] sm:$0xff] }
 0x18f   :  { %3702 = vmatpush1.xpose.msk.msra.mxu0 %vm1568_vm14, %v3960_v16  ;;  %3734 = vmatpush1.xpose.msk.msra.mxu1 %vm1570_vm15, %v3960_v16  ;;  %vm1504_vm14 = vcmp.eq.s32.totalorder %v4251_v35, %v5092_v24  ;;  %vm1506_vm15 = vcmp.eq.s32.totalorder %v4260_v36, %v5092_v24  ;;  %v3884_v36 = vld [vmem:[#allocation5 + $0x48] sm:$0xff] }
 0x190   :  { %3703 = vmatprep.subr.msk.mxu0 %vm1553_vm0, %v3960_v16  ;;  %3735 = vmatprep.subr.msk.mxu1 %vm1555_vm1, %v3960_v16  ;;  %vm1749_vm0 = vcmp.eq.s32.totalorder %v4463_v46, %v4865_v58  ;;  %vm1751_vm1 = vcmp.eq.s32.totalorder %v4468_v47, %v4865_v58 }
 0x193   :  { %3704 = vmatpush1.xpose.msk.msra.mxu0 %vm1552_vm2, %v3960_v16  ;;  %3736 = vmatpush1.xpose.msk.msra.mxu1 %vm1554_vm3, %v3960_v16  ;;  %vm1748_vm2 = vcmp.eq.s32.totalorder %v4481_v48, %v4865_v58  ;;  %vm1750_vm3 = vcmp.eq.s32.totalorder %v4486_v49, %v4865_v58 }
 0x194   :  { %3705 = vmatprep.subr.msk.mxu0 %vm1537_vm4, %v3960_v16  ;;  %3737 = vmatprep.subr.msk.mxu1 %vm1539_vm5, %v3960_v16  ;;  %vm1733_vm4 = vcmp.eq.s32.totalorder %v4463_v46, %v4880_v59  ;;  %vm1735_vm5 = vcmp.eq.s32.totalorder %v4468_v47, %v4880_v59 }
 0x197   :  { %3706 = vmatpush1.xpose.msk.msra.mxu0 %vm1536_vm6, %v3960_v16  ;;  %3738 = vmatpush1.xpose.msk.msra.mxu1 %vm1538_vm7, %v3960_v16  ;;  %vm1732_vm6 = vcmp.eq.s32.totalorder %v4481_v48, %v4880_v59  ;;  %vm1734_vm7 = vcmp.eq.s32.totalorder %v4486_v49, %v4880_v59 }
 0x198   :  { %3707 = vmatprep.subr.msk.mxu0 %vm1521_vm8, %v3960_v16  ;;  %3739 = vmatprep.subr.msk.mxu1 %vm1523_vm9, %v3960_v16  ;;  %vm1717_vm8 = vcmp.eq.s32.totalorder %v4463_v46, %v4895_v62  ;;  %vm1719_vm9 = vcmp.eq.s32.totalorder %v4468_v47, %v4895_v62 }
 0x19b   :  { %3708 = vmatpush1.xpose.msk.msra.mxu0 %vm1520_vm10, %v3960_v16  ;;  %3740 = vmatpush1.xpose.msk.msra.mxu1 %vm1522_vm11, %v3960_v16  ;;  %vm1716_vm10 = vcmp.eq.s32.totalorder %v4481_v48, %v4895_v62  ;;  %vm1718_vm11 = vcmp.eq.s32.totalorder %v4486_v49, %v4895_v62 }
 0x19c   :  { %3709 = vmatprep.subr.msk.mxu0 %vm1505_vm12, %v3960_v16  ;;  %3741 = vmatprep.subr.msk.mxu1 %vm1507_vm13, %v3960_v16  ;;  %vm1701_vm12 = vcmp.eq.s32.totalorder %v4463_v46, %v4912_v5  ;;  %vm1703_vm13 = vcmp.eq.s32.totalorder %v4468_v47, %v4912_v5 }
 0x19f   :  { %3710 = vmatpush1.xpose.msk.msra.mxu0 %vm1504_vm14, %v3960_v16  ;;  %3742 = vmatpush1.xpose.msk.msra.mxu1 %vm1506_vm15, %v3960_v16  ;;  %vm1700_vm14 = vcmp.eq.s32.totalorder %v4481_v48, %v4912_v5  ;;  %vm1702_vm15 = vcmp.eq.s32.totalorder %v4486_v49, %v4912_v5 }
 0x1a0   :  { %3743 = vmatprep.subr.msk.mxu0 %vm1749_vm0, %v3960_v16  ;;  %3775 = vmatprep.subr.msk.mxu1 %vm1751_vm1, %v3960_v16  ;;  %vm1685_vm0 = vcmp.eq.s32.totalorder %v4463_v46, %v4927_v8  ;;  %vm1687_vm1 = vcmp.eq.s32.totalorder %v4468_v47, %v4927_v8 }
 0x1a2   :  { %v5325_v30 = vpop.f32.mrf.mxu0  ;;  %2474 = vmatmul.mubr.f32.vlgmr.msra.gmra.mxu0 %v3882_v31  ;;  %v5327_v32 = vpop.f32.mrf.mxu1  ;;  %2544 = vmatmul.mubr.f32.vlgmr.msra.gmra.mxu1 %v3883_v33 }
 0x1a3   :  { %3744 = vmatpush1.xpose.msk.msra.mxu0 %vm1748_vm2, %v3960_v16  ;;  %3776 = vmatpush1.xpose.msk.msra.mxu1 %vm1750_vm3, %v3960_v16  ;;  %vm1684_vm2 = vcmp.eq.s32.totalorder %v4481_v48, %v4927_v8  ;;  %vm1686_vm3 = vcmp.eq.s32.totalorder %v4486_v49, %v4927_v8  ;;  %v1269_v38 = vadd.f32 %v5325_v30, %v5139_v27 }
 0x1a4   :  { %v1270_v34 = vpop.f32.mrf.mxu0  ;;  %v1340_v35 = vpop.f32.mrf.mxu1  ;;  %3745 = vmatprep.subr.msk.mxu0 %vm1733_vm4, %v3960_v16  ;;  %3777 = vmatprep.subr.msk.mxu1 %vm1735_vm5, %v3960_v16  ;;  %vm1669_vm4 = vcmp.eq.s32.totalorder %v4463_v46, %v4942_v9  ;;  %vm1671_vm5 = vcmp.eq.s32.totalorder %v4468_v47, %v4942_v9 }
 0x1a5   :  { %2613 = vmatprep.mubr.f32.mxu0 %v3884_v36  ;;  %2683 = vmatprep.mubr.f32.mxu1 %v3885_v37  ;;  %v1339_v39 = vadd.f32 %v5327_v32, %v1269_v38 }
 0x1a7   :  { %3746 = vmatpush1.xpose.msk.msra.mxu0 %vm1732_vm6, %v3960_v16  ;;  %3778 = vmatpush1.xpose.msk.msra.mxu1 %vm1734_vm7, %v3960_v16  ;;  %vm1668_vm6 = vcmp.eq.s32.totalorder %v4481_v48, %v4942_v9  ;;  %vm1670_vm7 = vcmp.eq.s32.totalorder %v4486_v49, %v4942_v9 }
 0x1a8   :  { %3747 = vmatprep.subr.msk.mxu0 %vm1717_vm8, %v3960_v16  ;;  %3779 = vmatprep.subr.msk.mxu1 %vm1719_vm9, %v3960_v16  ;;  %vm1653_vm8 = vcmp.eq.s32.totalorder %v4463_v46, %v4957_v14  ;;  %vm1655_vm9 = vcmp.eq.s32.totalorder %v4468_v47, %v4957_v14 }
 0x1ab   :  { %3748 = vmatpush1.xpose.msk.msra.mxu0 %vm1716_vm10, %v3960_v16  ;;  %3780 = vmatpush1.xpose.msk.msra.mxu1 %vm1718_vm11, %v3960_v16  ;;  %vm1652_vm10 = vcmp.eq.s32.totalorder %v4481_v48, %v4957_v14  ;;  %vm1654_vm11 = vcmp.eq.s32.totalorder %v4486_v49, %v4957_v14 }
 0x1ac   :  { %3749 = vmatprep.subr.msk.mxu0 %vm1701_vm12, %v3960_v16  ;;  %3781 = vmatprep.subr.msk.mxu1 %vm1703_vm13, %v3960_v16  ;;  %vm1637_vm12 = vcmp.eq.s32.totalorder %v4463_v46, %v4972_v15  ;;  %vm1639_vm13 = vcmp.eq.s32.totalorder %v4468_v47, %v4972_v15 }
 0x1af   :  { %3750 = vmatpush1.xpose.msk.msra.mxu0 %vm1700_vm14, %v3960_v16  ;;  %3782 = vmatpush1.xpose.msk.msra.mxu1 %vm1702_vm15, %v3960_v16  ;;  %vm1636_vm14 = vcmp.eq.s32.totalorder %v4481_v48, %v4972_v15  ;;  %vm1638_vm15 = vcmp.eq.s32.totalorder %v4486_v49, %v4972_v15 }
 0x1b0   :  { %3751 = vmatprep.subr.msk.mxu0 %vm1685_vm0, %v3960_v16  ;;  %3783 = vmatprep.subr.msk.mxu1 %vm1687_vm1, %v3960_v16  ;;  %vm1621_vm0 = vcmp.eq.s32.totalorder %v4463_v46, %v4987_v17  ;;  %vm1623_vm1 = vcmp.eq.s32.totalorder %v4468_v47, %v4987_v17 }
 0x1b3   :  { %3752 = vmatpush1.xpose.msk.msra.mxu0 %vm1684_vm2, %v3960_v16  ;;  %3784 = vmatpush1.xpose.msk.msra.mxu1 %vm1686_vm3, %v3960_v16  ;;  %vm1620_vm2 = vcmp.eq.s32.totalorder %v4481_v48, %v4987_v17  ;;  %vm1622_vm3 = vcmp.eq.s32.totalorder %v4486_v49, %v4987_v17 }
 0x1b4   :  { %3753 = vmatprep.subr.msk.mxu0 %vm1669_vm4, %v3960_v16  ;;  %3785 = vmatprep.subr.msk.mxu1 %vm1671_vm5, %v3960_v16  ;;  %vm1605_vm4 = vcmp.eq.s32.totalorder %v4463_v46, %v5002_v18  ;;  %vm1607_vm5 = vcmp.eq.s32.totalorder %v4468_v47, %v5002_v18 }
 0x1b7   :  { %3754 = vmatpush1.xpose.msk.msra.mxu0 %vm1668_vm6, %v3960_v16  ;;  %3786 = vmatpush1.xpose.msk.msra.mxu1 %vm1670_vm7, %v3960_v16  ;;  %vm1604_vm6 = vcmp.eq.s32.totalorder %v4481_v48, %v5002_v18  ;;  %vm1606_vm7 = vcmp.eq.s32.totalorder %v4486_v49, %v5002_v18 }
 0x1b8   :  { %3755 = vmatprep.subr.msk.mxu0 %vm1653_vm8, %v3960_v16  ;;  %3787 = vmatprep.subr.msk.mxu1 %vm1655_vm9, %v3960_v16  ;;  %vm1589_vm8 = vcmp.eq.s32.totalorder %v4463_v46, %v5017_v19  ;;  %vm1591_vm9 = vcmp.eq.s32.totalorder %v4468_v47, %v5017_v19 }
 0x1bb   :  { %3756 = vmatpush1.xpose.msk.msra.mxu0 %vm1652_vm10, %v3960_v16  ;;  %3788 = vmatpush1.xpose.msk.msra.mxu1 %vm1654_vm11, %v3960_v16  ;;  %vm1588_vm10 = vcmp.eq.s32.totalorder %v4481_v48, %v5017_v19  ;;  %vm1590_vm11 = vcmp.eq.s32.totalorder %v4486_v49, %v5017_v19 }
 0x1bc   :  { %3757 = vmatprep.subr.msk.mxu0 %vm1637_vm12, %v3960_v16  ;;  %3789 = vmatprep.subr.msk.mxu1 %vm1639_vm13, %v3960_v16  ;;  %vm1573_vm12 = vcmp.eq.s32.totalorder %v4463_v46, %v5032_v20  ;;  %vm1575_vm13 = vcmp.eq.s32.totalorder %v4468_v47, %v5032_v20 }
 0x1bf   :  { %3758 = vmatpush1.xpose.msk.msra.mxu0 %vm1636_vm14, %v3960_v16  ;;  %3790 = vmatpush1.xpose.msk.msra.mxu1 %vm1638_vm15, %v3960_v16  ;;  %vm1572_vm14 = vcmp.eq.s32.totalorder %v4481_v48, %v5032_v20  ;;  %vm1574_vm15 = vcmp.eq.s32.totalorder %v4486_v49, %v5032_v20 }
 0x1c0   :  { %3759 = vmatprep.subr.msk.mxu0 %vm1621_vm0, %v3960_v16  ;;  %3791 = vmatprep.subr.msk.mxu1 %vm1623_vm1, %v3960_v16  ;;  %vm1557_vm0 = vcmp.eq.s32.totalorder %v4463_v46, %v5047_v21  ;;  %vm1559_vm1 = vcmp.eq.s32.totalorder %v4468_v47, %v5047_v21 }
 0x1c3   :  { %3760 = vmatpush1.xpose.msk.msra.mxu0 %vm1620_vm2, %v3960_v16  ;;  %3792 = vmatpush1.xpose.msk.msra.mxu1 %vm1622_vm3, %v3960_v16  ;;  %vm1556_vm2 = vcmp.eq.s32.totalorder %v4481_v48, %v5047_v21  ;;  %vm1558_vm3 = vcmp.eq.s32.totalorder %v4486_v49, %v5047_v21 }
 0x1c4   :  { %3761 = vmatprep.subr.msk.mxu0 %vm1605_vm4, %v3960_v16  ;;  %3793 = vmatprep.subr.msk.mxu1 %vm1607_vm5, %v3960_v16  ;;  %vm1541_vm4 = vcmp.eq.s32.totalorder %v4463_v46, %v5062_v22  ;;  %vm1543_vm5 = vcmp.eq.s32.totalorder %v4468_v47, %v5062_v22 }
 0x1c7   :  { %3762 = vmatpush1.xpose.msk.msra.mxu0 %vm1604_vm6, %v3960_v16  ;;  %3794 = vmatpush1.xpose.msk.msra.mxu1 %vm1606_vm7, %v3960_v16  ;;  %vm1540_vm6 = vcmp.eq.s32.totalorder %v4481_v48, %v5062_v22  ;;  %vm1542_vm7 = vcmp.eq.s32.totalorder %v4486_v49, %v5062_v22 }
 0x1c8   :  { %3763 = vmatprep.subr.msk.mxu0 %vm1589_vm8, %v3960_v16  ;;  %3795 = vmatprep.subr.msk.mxu1 %vm1591_vm9, %v3960_v16  ;;  %vm1525_vm8 = vcmp.eq.s32.totalorder %v4463_v46, %v5077_v23  ;;  %vm1527_vm9 = vcmp.eq.s32.totalorder %v4468_v47, %v5077_v23 }
 0x1cb   :  { %3764 = vmatpush1.xpose.msk.msra.mxu0 %vm1588_vm10, %v3960_v16  ;;  %3796 = vmatpush1.xpose.msk.msra.mxu1 %vm1590_vm11, %v3960_v16  ;;  %vm1524_vm10 = vcmp.eq.s32.totalorder %v4481_v48, %v5077_v23  ;;  %vm1526_vm11 = vcmp.eq.s32.totalorder %v4486_v49, %v5077_v23 }
 0x1cc   :  { %3765 = vmatprep.subr.msk.mxu0 %vm1573_vm12, %v3960_v16  ;;  %3797 = vmatprep.subr.msk.mxu1 %vm1575_vm13, %v3960_v16  ;;  %vm1509_vm12 = vcmp.eq.s32.totalorder %v4463_v46, %v5092_v24  ;;  %vm1511_vm13 = vcmp.eq.s32.totalorder %v4468_v47, %v5092_v24  ;;  %v3887_v47 = vld [vmem:[#allocation5 + $0x50] sm:$0xff] }
 0x1cf   :  { %3766 = vmatpush1.xpose.msk.msra.mxu0 %vm1572_vm14, %v3960_v16  ;;  %3798 = vmatpush1.xpose.msk.msra.mxu1 %vm1574_vm15, %v3960_v16  ;;  %vm1508_vm14 = vcmp.eq.s32.totalorder %v4481_v48, %v5092_v24  ;;  %vm1510_vm15 = vcmp.eq.s32.totalorder %v4486_v49, %v5092_v24 }
 0x1d0   :  { %3767 = vmatprep.subr.msk.mxu0 %vm1557_vm0, %v3960_v16  ;;  %3799 = vmatprep.subr.msk.mxu1 %vm1559_vm1, %v3960_v16  ;;  %vm1753_vm0 = vcmp.eq.s32.totalorder %v4273_v40, %v4865_v58  ;;  %vm1755_vm1 = vcmp.eq.s32.totalorder %v4276_v41, %v4865_v58 }
 0x1d3   :  { %3768 = vmatpush1.xpose.msk.msra.mxu0 %vm1556_vm2, %v3960_v16  ;;  %3800 = vmatpush1.xpose.msk.msra.mxu1 %vm1558_vm3, %v3960_v16  ;;  %vm1752_vm2 = vcmp.eq.s32.totalorder %v4283_v42, %v4865_v58  ;;  %vm1754_vm3 = vcmp.eq.s32.totalorder %v4286_v43, %v4865_v58 }
 0x1d4   :  { %3769 = vmatprep.subr.msk.mxu0 %vm1541_vm4, %v3960_v16  ;;  %3801 = vmatprep.subr.msk.mxu1 %vm1543_vm5, %v3960_v16  ;;  %vm1737_vm4 = vcmp.eq.s32.totalorder %v4273_v40, %v4880_v59  ;;  %vm1739_vm5 = vcmp.eq.s32.totalorder %v4276_v41, %v4880_v59 }
 0x1d7   :  { %3770 = vmatpush1.xpose.msk.msra.mxu0 %vm1540_vm6, %v3960_v16  ;;  %3802 = vmatpush1.xpose.msk.msra.mxu1 %vm1542_vm7, %v3960_v16  ;;  %vm1736_vm6 = vcmp.eq.s32.totalorder %v4283_v42, %v4880_v59  ;;  %vm1738_vm7 = vcmp.eq.s32.totalorder %v4286_v43, %v4880_v59 }
 0x1d8   :  { %3771 = vmatprep.subr.msk.mxu0 %vm1525_vm8, %v3960_v16  ;;  %3803 = vmatprep.subr.msk.mxu1 %vm1527_vm9, %v3960_v16  ;;  %vm1721_vm8 = vcmp.eq.s32.totalorder %v4273_v40, %v4895_v62  ;;  %vm1723_vm9 = vcmp.eq.s32.totalorder %v4276_v41, %v4895_v62 }
 0x1db   :  { %3772 = vmatpush1.xpose.msk.msra.mxu0 %vm1524_vm10, %v3960_v16  ;;  %3804 = vmatpush1.xpose.msk.msra.mxu1 %vm1526_vm11, %v3960_v16  ;;  %vm1720_vm10 = vcmp.eq.s32.totalorder %v4283_v42, %v4895_v62  ;;  %vm1722_vm11 = vcmp.eq.s32.totalorder %v4286_v43, %v4895_v62 }
 0x1dc   :  { %3773 = vmatprep.subr.msk.mxu0 %vm1509_vm12, %v3960_v16  ;;  %3805 = vmatprep.subr.msk.mxu1 %vm1511_vm13, %v3960_v16  ;;  %vm1705_vm12 = vcmp.eq.s32.totalorder %v4273_v40, %v4912_v5  ;;  %vm1707_vm13 = vcmp.eq.s32.totalorder %v4276_v41, %v4912_v5 }
 0x1df   :  { %3774 = vmatpush1.xpose.msk.msra.mxu0 %vm1508_vm14, %v3960_v16  ;;  %3806 = vmatpush1.xpose.msk.msra.mxu1 %vm1510_vm15, %v3960_v16  ;;  %vm1704_vm14 = vcmp.eq.s32.totalorder %v4283_v42, %v4912_v5  ;;  %vm1706_vm15 = vcmp.eq.s32.totalorder %v4286_v43, %v4912_v5 }
 0x1e0   :  { %3807 = vmatprep.subr.msk.mxu0 %vm1753_vm0, %v3960_v16  ;;  %3839 = vmatprep.subr.msk.mxu1 %vm1755_vm1, %v3960_v16  ;;  %vm1689_vm0 = vcmp.eq.s32.totalorder %v4273_v40, %v4927_v8  ;;  %vm1691_vm1 = vcmp.eq.s32.totalorder %v4276_v41, %v4927_v8 }
 0x1e2   :  { %v1408_v44 = vpop.f32.mrf.mxu0  ;;  %2614 = vmatmul.mubr.f32.vlgmr.msra.gmra.mxu0 %v3886_v45  ;;  %v1478_v46 = vpop.f32.mrf.mxu1  ;;  %2684 = vmatmul.mubr.f32.vlgmr.msra.gmra.mxu1 %v3887_v47 }
 0x1e3   :  { %v1409_v48 = vadd.f32 %v1408_v44, %v1339_v39  ;;  %3808 = vmatpush1.xpose.msk.msra.mxu0 %vm1752_vm2, %v3960_v16  ;;  %3840 = vmatpush1.xpose.msk.msra.mxu1 %vm1754_vm3, %v3960_v16  ;;  %vm1688_vm2 = vcmp.eq.s32.totalorder %v4283_v42, %v4927_v8  ;;  %vm1690_vm3 = vcmp.eq.s32.totalorder %v4286_v43, %v4927_v8 }
 0x1e4   :  { %v1410_v49 = vpop.f32.mrf.mxu0  ;;  %v1480_v50 = vpop.f32.mrf.mxu1  ;;  %3809 = vmatprep.subr.msk.mxu0 %vm1737_vm4, %v3960_v16  ;;  %3841 = vmatprep.subr.msk.mxu1 %vm1739_vm5, %v3960_v16  ;;  %vm1673_vm4 = vcmp.eq.s32.totalorder %v4273_v40, %v4942_v9  ;;  %vm1675_vm5 = vcmp.eq.s32.totalorder %v4276_v41, %v4942_v9 }
 0x1e5   :  { %v1479_v51 = vadd.f32 %v1478_v46, %v1409_v48  ;;  %2753 = vmatprep.mubr.f32.mxu0 %v3888_v52  ;;  %2823 = vmatprep.mubr.f32.mxu1 %v3889_v53 }
 0x1e7   :  { %3810 = vmatpush1.xpose.msk.msra.mxu0 %vm1736_vm6, %v3960_v16  ;;  %3842 = vmatpush1.xpose.msk.msra.mxu1 %vm1738_vm7, %v3960_v16  ;;  %1483 = vst [vmem:[#allocation7] sm:$0xff] %v1479_v51  ;;  %vm1672_vm6 = vcmp.eq.s32.totalorder %v4283_v42, %v4942_v9  ;;  %vm1674_vm7 = vcmp.eq.s32.totalorder %v4286_v43, %v4942_v9 }
 0x1e8   :  { %3811 = vmatprep.subr.msk.mxu0 %vm1721_vm8, %v3960_v16  ;;  %3843 = vmatprep.subr.msk.mxu1 %vm1723_vm9, %v3960_v16  ;;  %vm1657_vm8 = vcmp.eq.s32.totalorder %v4273_v40, %v4957_v14  ;;  %vm1659_vm9 = vcmp.eq.s32.totalorder %v4276_v41, %v4957_v14 }
 0x1eb   :  { %3812 = vmatpush1.xpose.msk.msra.mxu0 %vm1720_vm10, %v3960_v16  ;;  %3844 = vmatpush1.xpose.msk.msra.mxu1 %vm1722_vm11, %v3960_v16  ;;  %vm1656_vm10 = vcmp.eq.s32.totalorder %v4283_v42, %v4957_v14  ;;  %vm1658_vm11 = vcmp.eq.s32.totalorder %v4286_v43, %v4957_v14 }
 0x1ec   :  { %3813 = vmatprep.subr.msk.mxu0 %vm1705_vm12, %v3960_v16  ;;  %3845 = vmatprep.subr.msk.mxu1 %vm1707_vm13, %v3960_v16  ;;  %vm1641_vm12 = vcmp.eq.s32.totalorder %v4273_v40, %v4972_v15  ;;  %vm1643_vm13 = vcmp.eq.s32.totalorder %v4276_v41, %v4972_v15 }
 0x1ef   :  { %3814 = vmatpush1.xpose.msk.msra.mxu0 %vm1704_vm14, %v3960_v16  ;;  %3846 = vmatpush1.xpose.msk.msra.mxu1 %vm1706_vm15, %v3960_v16  ;;  %vm1640_vm14 = vcmp.eq.s32.totalorder %v4283_v42, %v4972_v15  ;;  %vm1642_vm15 = vcmp.eq.s32.totalorder %v4286_v43, %v4972_v15 }
 0x1f0   :  { %3815 = vmatprep.subr.msk.mxu0 %vm1689_vm0, %v3960_v16  ;;  %3847 = vmatprep.subr.msk.mxu1 %vm1691_vm1, %v3960_v16  ;;  %vm1625_vm0 = vcmp.eq.s32.totalorder %v4273_v40, %v4987_v17  ;;  %vm1627_vm1 = vcmp.eq.s32.totalorder %v4276_v41, %v4987_v17 }
 0x1f3   :  { %3816 = vmatpush1.xpose.msk.msra.mxu0 %vm1688_vm2, %v3960_v16  ;;  %3848 = vmatpush1.xpose.msk.msra.mxu1 %vm1690_vm3, %v3960_v16  ;;  %vm1624_vm2 = vcmp.eq.s32.totalorder %v4283_v42, %v4987_v17  ;;  %vm1626_vm3 = vcmp.eq.s32.totalorder %v4286_v43, %v4987_v17 }
 0x1f4   :  { %3817 = vmatprep.subr.msk.mxu0 %vm1673_vm4, %v3960_v16  ;;  %3849 = vmatprep.subr.msk.mxu1 %vm1675_vm5, %v3960_v16  ;;  %vm1609_vm4 = vcmp.eq.s32.totalorder %v4273_v40, %v5002_v18  ;;  %vm1611_vm5 = vcmp.eq.s32.totalorder %v4276_v41, %v5002_v18 }
 0x1f7   :  { %3818 = vmatpush1.xpose.msk.msra.mxu0 %vm1672_vm6, %v3960_v16  ;;  %3850 = vmatpush1.xpose.msk.msra.mxu1 %vm1674_vm7, %v3960_v16  ;;  %vm1608_vm6 = vcmp.eq.s32.totalorder %v4283_v42, %v5002_v18  ;;  %vm1610_vm7 = vcmp.eq.s32.totalorder %v4286_v43, %v5002_v18 }
 0x1f8   :  { %3819 = vmatprep.subr.msk.mxu0 %vm1657_vm8, %v3960_v16  ;;  %3851 = vmatprep.subr.msk.mxu1 %vm1659_vm9, %v3960_v16  ;;  %vm1593_vm8 = vcmp.eq.s32.totalorder %v4273_v40, %v5017_v19  ;;  %vm1595_vm9 = vcmp.eq.s32.totalorder %v4276_v41, %v5017_v19 }
 0x1fb   :  { %3820 = vmatpush1.xpose.msk.msra.mxu0 %vm1656_vm10, %v3960_v16  ;;  %3852 = vmatpush1.xpose.msk.msra.mxu1 %vm1658_vm11, %v3960_v16  ;;  %vm1592_vm10 = vcmp.eq.s32.totalorder %v4283_v42, %v5017_v19  ;;  %vm1594_vm11 = vcmp.eq.s32.totalorder %v4286_v43, %v5017_v19 }
 0x1fc   :  { %3821 = vmatprep.subr.msk.mxu0 %vm1641_vm12, %v3960_v16  ;;  %3853 = vmatprep.subr.msk.mxu1 %vm1643_vm13, %v3960_v16  ;;  %vm1577_vm12 = vcmp.eq.s32.totalorder %v4273_v40, %v5032_v20  ;;  %vm1579_vm13 = vcmp.eq.s32.totalorder %v4276_v41, %v5032_v20 }
 0x1ff   :  { %3822 = vmatpush1.xpose.msk.msra.mxu0 %vm1640_vm14, %v3960_v16  ;;  %3854 = vmatpush1.xpose.msk.msra.mxu1 %vm1642_vm15, %v3960_v16  ;;  %vm1576_vm14 = vcmp.eq.s32.totalorder %v4283_v42, %v5032_v20  ;;  %vm1578_vm15 = vcmp.eq.s32.totalorder %v4286_v43, %v5032_v20 }
 0x200   :  { %3823 = vmatprep.subr.msk.mxu0 %vm1625_vm0, %v3960_v16  ;;  %3855 = vmatprep.subr.msk.mxu1 %vm1627_vm1, %v3960_v16  ;;  %vm1561_vm0 = vcmp.eq.s32.totalorder %v4273_v40, %v5047_v21  ;;  %vm1563_vm1 = vcmp.eq.s32.totalorder %v4276_v41, %v5047_v21 }
 0x203   :  { %3824 = vmatpush1.xpose.msk.msra.mxu0 %vm1624_vm2, %v3960_v16  ;;  %3856 = vmatpush1.xpose.msk.msra.mxu1 %vm1626_vm3, %v3960_v16  ;;  %vm1560_vm2 = vcmp.eq.s32.totalorder %v4283_v42, %v5047_v21  ;;  %vm1562_vm3 = vcmp.eq.s32.totalorder %v4286_v43, %v5047_v21 }
 0x204   :  { %3825 = vmatprep.subr.msk.mxu0 %vm1609_vm4, %v3960_v16  ;;  %3857 = vmatprep.subr.msk.mxu1 %vm1611_vm5, %v3960_v16  ;;  %vm1545_vm4 = vcmp.eq.s32.totalorder %v4273_v40, %v5062_v22  ;;  %vm1547_vm5 = vcmp.eq.s32.totalorder %v4276_v41, %v5062_v22 }
 0x207   :  { %3826 = vmatpush1.xpose.msk.msra.mxu0 %vm1608_vm6, %v3960_v16  ;;  %3858 = vmatpush1.xpose.msk.msra.mxu1 %vm1610_vm7, %v3960_v16  ;;  %vm1544_vm6 = vcmp.eq.s32.totalorder %v4283_v42, %v5062_v22  ;;  %vm1546_vm7 = vcmp.eq.s32.totalorder %v4286_v43, %v5062_v22 }
 0x208   :  { %3827 = vmatprep.subr.msk.mxu0 %vm1593_vm8, %v3960_v16  ;;  %3859 = vmatprep.subr.msk.mxu1 %vm1595_vm9, %v3960_v16  ;;  %vm1529_vm8 = vcmp.eq.s32.totalorder %v4273_v40, %v5077_v23  ;;  %vm1531_vm9 = vcmp.eq.s32.totalorder %v4276_v41, %v5077_v23 }
 0x20b   :  { %3828 = vmatpush1.xpose.msk.msra.mxu0 %vm1592_vm10, %v3960_v16  ;;  %3860 = vmatpush1.xpose.msk.msra.mxu1 %vm1594_vm11, %v3960_v16  ;;  %vm1528_vm10 = vcmp.eq.s32.totalorder %v4283_v42, %v5077_v23  ;;  %vm1530_vm11 = vcmp.eq.s32.totalorder %v4286_v43, %v5077_v23 }
 0x20c   :  { %3829 = vmatprep.subr.msk.mxu0 %vm1577_vm12, %v3960_v16  ;;  %3861 = vmatprep.subr.msk.mxu1 %vm1579_vm13, %v3960_v16  ;;  %vm1513_vm12 = vcmp.eq.s32.totalorder %v4273_v40, %v5092_v24  ;;  %vm1515_vm13 = vcmp.eq.s32.totalorder %v4276_v41, %v5092_v24  ;;  %v3890_v41 = vld [vmem:[#allocation5 + $0x60] sm:$0xff] }
 0x20f   :  { %3830 = vmatpush1.xpose.msk.msra.mxu0 %vm1576_vm14, %v3960_v16  ;;  %3862 = vmatpush1.xpose.msk.msra.mxu1 %vm1578_vm15, %v3960_v16  ;;  %vm1512_vm14 = vcmp.eq.s32.totalorder %v4283_v42, %v5092_v24  ;;  %vm1514_vm15 = vcmp.eq.s32.totalorder %v4286_v43, %v5092_v24 }
 0x210   :  { %3831 = vmatprep.subr.msk.mxu0 %vm1561_vm0, %v3960_v16  ;;  %3863 = vmatprep.subr.msk.mxu1 %vm1563_vm1, %v3960_v16 }
 0x213   :  { %3832 = vmatpush1.xpose.msk.msra.mxu0 %vm1560_vm2, %v3960_v16  ;;  %3864 = vmatpush1.xpose.msk.msra.mxu1 %vm1562_vm3, %v3960_v16 }
 0x214   :  { %3833 = vmatprep.subr.msk.mxu0 %vm1545_vm4, %v3960_v16  ;;  %3865 = vmatprep.subr.msk.mxu1 %vm1547_vm5, %v3960_v16 }
 0x217   :  { %3834 = vmatpush1.xpose.msk.msra.mxu0 %vm1544_vm6, %v3960_v16  ;;  %3866 = vmatpush1.xpose.msk.msra.mxu1 %vm1546_vm7, %v3960_v16 }
 0x218   :  { %3835 = vmatprep.subr.msk.mxu0 %vm1529_vm8, %v3960_v16  ;;  %3867 = vmatprep.subr.msk.mxu1 %vm1531_vm9, %v3960_v16 }
 0x21b   :  { %3836 = vmatpush1.xpose.msk.msra.mxu0 %vm1528_vm10, %v3960_v16  ;;  %3868 = vmatpush1.xpose.msk.msra.mxu1 %vm1530_vm11, %v3960_v16 }
 0x21c   :  { %3837 = vmatprep.subr.msk.mxu0 %vm1513_vm12, %v3960_v16  ;;  %3869 = vmatprep.subr.msk.mxu1 %vm1515_vm13, %v3960_v16 }
 0x21f   :  { %3838 = vmatpush1.xpose.msk.msra.mxu0 %vm1512_vm14, %v3960_v16  ;;  %3870 = vmatpush1.xpose.msk.msra.mxu1 %vm1514_vm15, %v3960_v16 }
 0x222   :  { %v2335_v40 = vpop.f32.mrf.mxu0  ;;  %2754 = vmatmul.mubr.f32.vlgmr.msra.gmra.mxu0 %v3890_v41  ;;  %2824 = vmatmul.mubr.f32.vlgmr.msra.gmra.mxu1 %v3891_v54  ;;  %v2405_v55 = vpop.f32.mrf.mxu1 }
 0x223   :  { %v2406_v56 = vadd.f32 %v2405_v55, %v2335_v40 }
 0x224   :  { %v2337_v57 = vpop.f32.mrf.mxu0  ;;  %v2407_v58 = vpop.f32.mrf.mxu1 }
 0x262   :  { %v2475_v59 = vpop.f32.mrf.mxu0  ;;  %v2545_v60 = vpop.f32.mrf.mxu1 }
 0x263   :  { %v2476_v61 = vadd.f32 %v2475_v59, %v2406_v56 }
 0x264   :  { %v2477_v42 = vpop.f32.mrf.mxu0  ;;  %v2547_v62 = vpop.f32.mrf.mxu1 }
 0x265   :  { %v2546_v63 = vadd.f32 %v2545_v60, %v2476_v61 }
 0x2a2   :  { %v2615_v43 = vpop.f32.mrf.mxu0  ;;  %v2685_v0 = vpop.f32.mrf.mxu1 }
 0x2a3   :  { %v2616_v16 = vadd.f32 %v2615_v43, %v2546_v63 }
 0x2a4   :  { %v2617_v2 = vpop.f32.mrf.mxu0  ;;  %v2687_v3 = vpop.f32.mrf.mxu1 }
 0x2a5   :  { %v2686_v4 = vadd.f32 %v2685_v0, %v2616_v16 }
 0x2e2   :  { %v2755_v5 = vpop.f32.mrf.mxu0  ;;  %v2825_v6 = vpop.f32.mrf.mxu1 }
 0x2e3   :  { %v2756_v7 = vadd.f32 %v2755_v5, %v2686_v4 }
 0x2e4   :  { %v2757_v8 = vpop.f32.mrf.mxu0  ;;  %v2827_v9 = vpop.f32.mrf.mxu1 }
 0x2e5   :  { %v2826_v14 = vadd.f32 %v2825_v6, %v2756_v7 }
 0x2e7   :  { %2830 = vst [vmem:[#allocation7 + $0x8] sm:$0xff] %v2826_v14 }
 0x2e8   :  { %3943 = shalt.err (!%p3940_p0)
}
 0x2e9   :  { %2840 = dma.vmem_to_hbm [thread:$0]  %s2838_s1, 256, %s5707_s2, [#allocation4]  }
 0x2ea   :  { %3956 = dma.done.wait [#allocation4], 256  }
 0x2eb   :  { %3957 = vsyncadd [#allocation4], 4294967040 }
 0x2ec   :  { %2844 = vsyncpa [#allocation3], 1 }
 0x2ed   :  { %2845 = vsyncpa [#allocation6], 1 }
 0x2ee   :  { %2846 = vsyncpa [#allocation4], 1 }

</bundles_post_ra>
